<compile_context>
chip_gen: v5e
topology: v5e:2x2
jax: 0.10.0
libtpu: 0.0.40
codegen_flags: <defaults>
</compile_context>

<pallas_src>
import functools
import math

import jax
import jax.numpy as jnp
from jax import lax
from jax.experimental import pallas as pl
from jax.experimental.pallas import tpu as pltpu

EPS = 1e-6
_LANE = 128


def _round_up(x, m):
    return (x + m - 1) // m * m


# --------------------------------- kernel ------------------------------------
def encoder_block_kernel(x_ref,
                         wq_ref, bq_ref, wk_ref, bk_ref, wv_ref, bv_ref,
                         wo_ref, bo_ref,
                         ln0a_ref, ln0b_ref, ln1a_ref, ln1b_ref,
                         w1_ref, b1_ref, w2_ref, b2_ref,
                         o_ref, *, n_head, d_k, d_k_pad, d_true):
    bt, seq, dp = x_ref.shape
    rows = bt * seq
    mm_dtype = wq_ref.dtype                       # bf16 matmul operands
    scale = 1.0 / math.sqrt(d_k)                  # true head dim, as in torch

    x = x_ref[...].astype(jnp.float32).reshape(rows, dp)

    # lane mask over the true (unpadded) channel count — only used by LayerNorm
    lane = lax.broadcasted_iota(jnp.int32, (1, dp), 1)
    ch_mask = (lane < d_true).astype(jnp.float32)
    inv_d = 1.0 / d_true
    inv_dm1 = 1.0 / max(d_true - 1, 1)

    def layer_norm(t, a, b):
        # module's LayerNorm: unbiased variance (N-1), eps added to the std.
        mean = jnp.sum(t, axis=-1, keepdims=True) * inv_d   # pad lanes are zero
        diff = (t - mean) * ch_mask
        var = jnp.sum(diff * diff, axis=-1, keepdims=True) * inv_dm1
        return a * (t - mean) / (jnp.sqrt(var) + EPS) + b   # a,b zero on pad lanes

    def split_heads(t):                            # (rows, Dp) -> (Bt*H, L, dkp)
        t = t.reshape(bt, seq, n_head, d_k_pad)
        return jnp.swapaxes(t, 1, 2).reshape(bt * n_head, seq, d_k_pad)

    # ----- sublayer 0: x + MHA(LN0(x)), self-attention (q = k = v = LN(x)) ----
    xn = layer_norm(x, ln0a_ref[...], ln0b_ref[...]).astype(mm_dtype)
    q = jnp.dot(xn, wq_ref[...], preferred_element_type=jnp.float32) + bq_ref[...]
    k = jnp.dot(xn, wk_ref[...], preferred_element_type=jnp.float32) + bk_ref[...]
    v = jnp.dot(xn, wv_ref[...], preferred_element_type=jnp.float32) + bv_ref[...]

    qh = split_heads(q * scale).astype(mm_dtype)   # scale folded into q once
    kh = split_heads(k).astype(mm_dtype)
    vh = split_heads(v).astype(mm_dtype)

    # all heads in one (Bt*H)-batched contraction — no per-head lane slicing
    s = jnp.einsum("bqd,bkd->bqk", qh, kh, preferred_element_type=jnp.float32)
    s = s - jnp.max(s, axis=-1, keepdims=True)
    e = jnp.exp(s)
    p = e * pl.reciprocal(jnp.sum(e, axis=-1, keepdims=True), approx=True)
    ctx = jnp.einsum("bqk,bkd->bqd", p.astype(mm_dtype), vh,
                     preferred_element_type=jnp.float32)

    # merge heads back and do ONE dense (rows, Dp) @ (Dp, Dp) output projection
    ctx = jnp.swapaxes(ctx.reshape(bt, n_head, seq, d_k_pad), 1, 2)
    ctx = ctx.reshape(rows, dp).astype(mm_dtype)
    x = x + jnp.dot(ctx, wo_ref[...],
                    preferred_element_type=jnp.float32) + bo_ref[...]
    # (dropout == identity in eval mode)

    # ----- sublayer 1: x + FFN(LN1(x)) ----------------------------------------
    xn = layer_norm(x, ln1a_ref[...], ln1b_ref[...]).astype(mm_dtype)
    h1 = jnp.dot(xn, w1_ref[...], preferred_element_type=jnp.float32) + b1_ref[...]
    h1 = jnp.maximum(h1, 0.0).astype(mm_dtype)
    x = x + jnp.dot(h1, w2_ref[...],
                    preferred_element_type=jnp.float32) + b2_ref[...]

    o_ref[...] = x.reshape(bt, seq, dp).astype(o_ref.dtype)   # Dp is lane-dense


# ----------------------------- wrapper helpers --------------------------------
def _vmem_capacity_bytes():
    try:
        return int(pltpu.get_tpu_info().vmem_capacity_bytes)
    except Exception:                       # hardware query only; not a compile probe
        return 64 * 1024 * 1024             # conservative (v7x per-TensorCore)


def _pick_batch_tile(batch, seq, target_rows):
    cap = max(1, min(batch, max(1, target_rows // max(seq, 1))))
    if batch >= 2:                          # keep >= 2 grid steps (v7x has 2 TCs)
        cap = min(cap, batch // 2)
    for bt in range(cap, 0, -1):
        if batch % bt == 0:
            return bt
    return 1


def _weight_spec_kwargs(single_buffer):
    # Feature check (not a compile probe): single-buffer grid-invariant weight
    # blocks only if the installed Pallas supports pipeline_mode=pl.Buffered.
    if not single_buffer or not hasattr(pl, "Buffered"):
        return {}
    try:
        pl.BlockSpec((8, 128), lambda i: (0, 0), pipeline_mode=pl.Buffered(1))
    except TypeError:
        return {}
    return {"pipeline_mode": pl.Buffered(1)}


def _pad_cols(a, new):
    return jnp.pad(a, [(0, 0)] * (a.ndim - 1) + [(0, new - a.shape[-1])])


def _pad_rows(a, new):
    return jnp.pad(a, [(0, new - a.shape[0])] + [(0, 0)] * (a.ndim - 1))


def _pad_head_cols(w, n_head, d_k, d_k_pad):
    # (din, H*dk) -> (din, H*dkp): zero-pad each head's slice (keeps head bounds)
    din = w.shape[0]
    w = w.reshape(din, n_head, d_k)
    w = jnp.pad(w, ((0, 0), (0, 0), (0, d_k_pad - d_k)))
    return w.reshape(din, n_head * d_k_pad)


def _pad_head_rows(w, n_head, d_k, d_k_pad):
    # (H*dk, dout) -> (H*dkp, dout)
    dout = w.shape[1]
    w = w.reshape(n_head, d_k, dout)
    w = jnp.pad(w, ((0, 0), (0, d_k_pad - d_k), (0, 0)))
    return w.reshape(n_head * d_k_pad, dout)


# --------------------------------- wrapper ------------------------------------
def transformer_encoder_block_pallas(x, params, n_head, *, batch_tile=None,
                                     single_buffer_weights=True):
    batch, seq, d = x.shape
    assert d % n_head == 0
    d_k = d // n_head
    dim_ff = params["w1"].shape[1]

    # lane-dense padded dims: per-head d_k -> d_k_pad so Dp = H*d_k_pad % 128 == 0
    g = _LANE // math.gcd(n_head, _LANE)
    d_k_pad = _round_up(d_k, g)
    dp = n_head * d_k_pad
    fp = _round_up(dim_ff, _LANE)

    vmem_cap = _vmem_capacity_bytes()
    vmem_limit = min(vmem_cap * 3 // 4, 112 * 1024 * 1024)
    target_rows = 1024 if vmem_cap >= 96 * 1024 * 1024 else 512
    if batch_tile is None:
        batch_tile = _pick_batch_tile(batch, seq, target_rows)
    assert batch % batch_tile == 0

    def vec(b):                              # biases / LN params as (1, dim) f32
        return jnp.reshape(b, (1, -1)).astype(jnp.float32)

    wdt = params["wq"].dtype                 # matmul operand dtype (bf16 preferred)
    weights = [
        _pad_rows(_pad_head_cols(params["wq"].astype(wdt), n_head, d_k, d_k_pad), dp),
        _pad_head_cols(vec(params["bq"]), n_head, d_k, d_k_pad),
        _pad_rows(_pad_head_cols(params["wk"].astype(wdt), n_head, d_k, d_k_pad), dp),
        _pad_head_cols(vec(params["bk"]), n_head, d_k, d_k_pad),
        _pad_rows(_pad_head_cols(params["wv"].astype(wdt), n_head, d_k, d_k_pad), dp),
        _pad_head_cols(vec(params["bv"]), n_head, d_k, d_k_pad),
        _pad_cols(_pad_head_rows(params["wo"].astype(wdt), n_head, d_k, d_k_pad), dp),
        _pad_cols(vec(params["bo"]), dp),
        _pad_cols(vec(params["ln0a"]), dp),
        _pad_cols(vec(params["ln0b"]), dp),
        _pad_cols(vec(params["ln1a"]), dp),
        _pad_cols(vec(params["ln1b"]), dp),
        _pad_cols(_pad_rows(params["w1"].astype(wdt), dp), fp),
        _pad_cols(vec(params["b1"]), fp),
        _pad_cols(_pad_rows(params["w2"].astype(wdt), fp), dp),
        _pad_cols(vec(params["b2"]), dp),
    ]
    x_pad = _pad_cols(x, dp) if dp != d else x

    wkw = _weight_spec_kwargs(single_buffer_weights)
    act_spec = pl.BlockSpec((batch_tile, seq, dp), lambda b: (b, 0, 0))
    in_specs = [act_spec] + [pl.BlockSpec(w.shape, lambda b: (0, 0), **wkw)
                             for w in weights]

    out = pl.pallas_call(
        functools.partial(encoder_block_kernel, n_head=n_head, d_k=d_k,
                          d_k_pad=d_k_pad, d_true=d),
        out_shape=jax.ShapeDtypeStruct((batch, seq, dp), x.dtype),
        grid_spec=pltpu.PrefetchScalarGridSpec(
            num_scalar_prefetch=0,
            grid=(batch // batch_tile,),
            in_specs=in_specs,
            out_specs=act_spec,
        ),
        compiler_params=pltpu.CompilerParams(
            dimension_semantics=("parallel",),
            vmem_limit_bytes=int(vmem_limit),
        ),
    )(x_pad, *weights)
    return out[..., :d] if dp != d else out


# ---------------------------- pure-JAX reference ------------------------------
def _ref_encoder_block(x, p, n_head, matmul_dtype=jnp.float32):
    batch, seq, d = x.shape
    d_k = d // n_head
    f32 = jnp.float32

    def mm(a, w):
        return jnp.matmul(a.astype(matmul_dtype), w.astype(matmul_dtype),
                          preferred_element_type=f32)

    def ln(t, a, b):
        mean = jnp.mean(t, axis=-1, keepdims=True)
        var = jnp.sum((t - mean) ** 2, axis=-1, keepdims=True) / (d - 1)
        return a * (t - mean) / (jnp.sqrt(var) + EPS) + b

    xn = ln(x, p["ln0a"], p["ln0b"])
    q = (mm(xn, p["wq"]) + p["bq"]) / math.sqrt(d_k)
    k = mm(xn, p["wk"]) + p["bk"]
    v = mm(xn, p["wv"]) + p["bv"]
    qh = q.reshape(batch, seq, n_head, d_k).transpose(0, 2, 1, 3)
    kh = k.reshape(batch, seq, n_head, d_k).transpose(0, 2, 1, 3)
    vh = v.reshape(batch, seq, n_head, d_k).transpose(0, 2, 1, 3)
    s = jnp.einsum("bhqd,bhkd->bhqk", qh.astype(matmul_dtype),
                   kh.astype(matmul_dtype), preferred_element_type=f32)
    pattn = jax.nn.softmax(s, axis=-1)
    ctx = jnp.einsum("bhqk,bhkd->bhqd", pattn.astype(matmul_dtype),
                     vh.astype(matmul_dtype), preferred_element_type=f32)
    ctx = ctx.transpose(0, 2, 1, 3).reshape(batch, seq, d)
    x = x + mm(ctx, p["wo"]) + p["bo"]
    xn = ln(x, p["ln1a"], p["ln1b"])
    h1 = jax.nn.relu(mm(xn, p["w1"]) + p["b1"])
    return x + mm(h1, p["w2"]) + p["b2"]


# -------------------------------- param init ----------------------------------
def init_block_params(key, dim, dim_ff, matmul_dtype=jnp.bfloat16):
    keys = jax.random.split(key, 12)
    s = 0.1

    def w(k, shape):   # matmul weights stored in the matmul dtype (bf16)
        return (s * jax.random.normal(k, shape, jnp.float32)).astype(matmul_dtype)

    def b(k, shape):   # biases / LN params stay f32
        return s * jax.random.normal(k, shape, jnp.float32)

    return {
        "wq": w(keys[0], (dim, dim)),    "bq": b(keys[1], (1, dim)),
        "wk": w(keys[2], (dim, dim)),    "bk": b(keys[3], (1, dim)),
        "wv": w(keys[4], (dim, dim)),    "bv": b(keys[5], (1, dim)),
        "wo": w(keys[6], (dim, dim)),    "bo": b(keys[7], (1, dim)),
        "ln0a": jnp.ones((1, dim), jnp.float32),
        "ln0b": jnp.zeros((1, dim), jnp.float32),
        "ln1a": jnp.ones((1, dim), jnp.float32),
        "ln1b": jnp.zeros((1, dim), jnp.float32),
        "w1": w(keys[8], (dim, dim_ff)),  "b1": b(keys[9], (1, dim_ff)),
        "w2": w(keys[10], (dim_ff, dim)), "b2": b(keys[11], (1, dim)),
    }


if __name__ == "__main__":
    batch, seq = 2, 8
    dim, dim_ff, n_head = 64, 128, 4

    key = jax.random.PRNGKey(0)
    kx, kp = jax.random.split(key)
    x = jax.random.normal(kx, (batch, seq, dim), jnp.float32)
    params = init_block_params(kp, dim, dim_ff, matmul_dtype=jnp.bfloat16)

    out = jax.block_until_ready(transformer_encoder_block_pallas(x, params, n_head))
    assert out.shape == (batch, seq, dim)

    # Check vs. a reference that mirrors the kernel's numerics policy (bf16
    # matmul operands, f32 accumulation); slack covers the approx EUP
    # reciprocal used in the softmax normalization.
    ref_bf16 = _ref_encoder_block(x, params, n_head, matmul_dtype=jnp.bfloat16)
    err = float(jnp.max(jnp.abs(out - ref_bf16)))
    assert jnp.allclose(out, ref_bf16, rtol=1e-2, atol=1e-2), \
        f"max abs err vs bf16-matched ref: {err}"

    # Sanity check vs. the module-faithful full-f32 reference (looser tol since
    # the kernel intentionally uses bf16 matmul operands).
    ref_f32 = _ref_encoder_block(x, params, n_head, matmul_dtype=jnp.float32)
    err32 = float(jnp.max(jnp.abs(out - ref_f32)))
    assert jnp.allclose(out, ref_f32, rtol=5e-2, atol=5e-2), \
        f"max abs err vs f32 ref: {err32}"

    print("KERNEL_OK")
</pallas_src>

<mosaic_0001>
module attributes {stable_mosaic.version = 11 : i64} {
  func.func @encoder_block_kernel(%arg0: i32, %arg1: memref<1x8x128xf32, #tpu.memory_space<vmem>>, %arg2: memref<128x128xbf16, #tpu.memory_space<vmem>>, %arg3: memref<1x128xf32, #tpu.memory_space<vmem>>, %arg4: memref<128x128xbf16, #tpu.memory_space<vmem>>, %arg5: memref<1x128xf32, #tpu.memory_space<vmem>>, %arg6: memref<128x128xbf16, #tpu.memory_space<vmem>>, %arg7: memref<1x128xf32, #tpu.memory_space<vmem>>, %arg8: memref<128x128xbf16, #tpu.memory_space<vmem>>, %arg9: memref<1x128xf32, #tpu.memory_space<vmem>>, %arg10: memref<1x128xf32, #tpu.memory_space<vmem>>, %arg11: memref<1x128xf32, #tpu.memory_space<vmem>>, %arg12: memref<1x128xf32, #tpu.memory_space<vmem>>, %arg13: memref<1x128xf32, #tpu.memory_space<vmem>>, %arg14: memref<128x128xbf16, #tpu.memory_space<vmem>>, %arg15: memref<1x128xf32, #tpu.memory_space<vmem>>, %arg16: memref<128x128xbf16, #tpu.memory_space<vmem>>, %arg17: memref<1x128xf32, #tpu.memory_space<vmem>>, %arg18: memref<1x8x128xf32, #tpu.memory_space<vmem>>) attributes {dimension_semantics = [#tpu.dimension_semantics<parallel>], iteration_bounds = array<i64: 2>, scalar_prefetch = 0 : i64, scratch_operands = 0 : i64, tpu.core_type = #tpu.core_type<tc>, window_params = [{transform_indices = @transform_0, window_bounds = array<i64: 1, 8, 128>}, {pipeline_mode = #tpu.pipeline_mode<synchronous>, transform_indices = @transform_1, window_bounds = array<i64: 128, 128>}, {pipeline_mode = #tpu.pipeline_mode<synchronous>, transform_indices = @transform_2, window_bounds = array<i64: 1, 128>}, {pipeline_mode = #tpu.pipeline_mode<synchronous>, transform_indices = @transform_3, window_bounds = array<i64: 128, 128>}, {pipeline_mode = #tpu.pipeline_mode<synchronous>, transform_indices = @transform_4, window_bounds = array<i64: 1, 128>}, {pipeline_mode = #tpu.pipeline_mode<synchronous>, transform_indices = @transform_5, window_bounds = array<i64: 128, 128>}, {pipeline_mode = #tpu.pipeline_mode<synchronous>, transform_indices = @transform_6, window_bounds = array<i64: 1, 128>}, {pipeline_mode = #tpu.pipeline_mode<synchronous>, transform_indices = @transform_7, window_bounds = array<i64: 128, 128>}, {pipeline_mode = #tpu.pipeline_mode<synchronous>, transform_indices = @transform_8, window_bounds = array<i64: 1, 128>}, {pipeline_mode = #tpu.pipeline_mode<synchronous>, transform_indices = @transform_9, window_bounds = array<i64: 1, 128>}, {pipeline_mode = #tpu.pipeline_mode<synchronous>, transform_indices = @transform_10, window_bounds = array<i64: 1, 128>}, {pipeline_mode = #tpu.pipeline_mode<synchronous>, transform_indices = @transform_11, window_bounds = array<i64: 1, 128>}, {pipeline_mode = #tpu.pipeline_mode<synchronous>, transform_indices = @transform_12, window_bounds = array<i64: 1, 128>}, {pipeline_mode = #tpu.pipeline_mode<synchronous>, transform_indices = @transform_13, window_bounds = array<i64: 128, 128>}, {pipeline_mode = #tpu.pipeline_mode<synchronous>, transform_indices = @transform_14, window_bounds = array<i64: 1, 128>}, {pipeline_mode = #tpu.pipeline_mode<synchronous>, transform_indices = @transform_15, window_bounds = array<i64: 128, 128>}, {pipeline_mode = #tpu.pipeline_mode<synchronous>, transform_indices = @transform_16, window_bounds = array<i64: 1, 128>}, {transform_indices = @transform_17, window_bounds = array<i64: 1, 8, 128>}]} {
    %c0 = arith.constant 0 : index
    %c0_0 = arith.constant 0 : index
    %c0_1 = arith.constant 0 : index
    %0 = vector.load %arg1[%c0, %c0_0, %c0_1] : memref<1x8x128xf32, #tpu.memory_space<vmem>>, vector<1x8x128xf32>
    %1 = vector.shape_cast %0 : vector<1x8x128xf32> to vector<8x128xf32>
    %2 = tpu.iota {dimensions = array<i32: 1>} : vector<1x128xi32>
    %c64_i32 = arith.constant 64 : i32
    %3 = vector.broadcast %c64_i32 : i32 to vector<1x128xi32>
    %4 = arith.cmpi slt, %2, %3 : vector<1x128xi32>
    %5 = arith.extui %4 : vector<1x128xi1> to vector<1x128xi32>
    %6 = arith.sitofp %5 : vector<1x128xi32> to vector<1x128xf32>
    %c0_2 = arith.constant 0 : index
    %c0_3 = arith.constant 0 : index
    %7 = vector.load %arg10[%c0_2, %c0_3] : memref<1x128xf32, #tpu.memory_space<vmem>>, vector<1x128xf32>
    %c0_4 = arith.constant 0 : index
    %c0_5 = arith.constant 0 : index
    %8 = vector.load %arg11[%c0_4, %c0_5] : memref<1x128xf32, #tpu.memory_space<vmem>>, vector<1x128xf32>
    %cst = arith.constant dense<0.000000e+00> : vector<8xf32>
    %9 = vector.multi_reduction <add>, %1, %cst [1] : vector<8x128xf32> to vector<8xf32>
    %10 = vector.shape_cast %9 : vector<8xf32> to vector<8x1xf32>
    %cst_6 = arith.constant 1.562500e-02 : f32
    %11 = vector.broadcast %cst_6 : f32 to vector<8x1xf32>
    %12 = arith.mulf %10, %11 : vector<8x1xf32>
    %13 = vector.broadcast %12 : vector<8x1xf32> to vector<8x128xf32>
    %14 = arith.subf %1, %13 : vector<8x128xf32>
    %15 = vector.broadcast %6 : vector<1x128xf32> to vector<8x128xf32>
    %16 = arith.mulf %14, %15 : vector<8x128xf32>
    %17 = arith.mulf %16, %16 : vector<8x128xf32>
    %cst_7 = arith.constant dense<0.000000e+00> : vector<8xf32>
    %18 = vector.multi_reduction <add>, %17, %cst_7 [1] : vector<8x128xf32> to vector<8xf32>
    %19 = vector.shape_cast %18 : vector<8xf32> to vector<8x1xf32>
    %cst_8 = arith.constant 0.0158730168 : f32
    %20 = vector.broadcast %cst_8 : f32 to vector<8x1xf32>
    %21 = arith.mulf %19, %20 : vector<8x1xf32>
    %22 = vector.broadcast %12 : vector<8x1xf32> to vector<8x128xf32>
    %23 = arith.subf %1, %22 : vector<8x128xf32>
    %24 = vector.broadcast %7 : vector<1x128xf32> to vector<8x128xf32>
    %25 = arith.mulf %24, %23 : vector<8x128xf32>
    %26 = math.sqrt %21 : vector<8x1xf32>
    %cst_9 = arith.constant 9.99999997E-7 : f32
    %27 = vector.broadcast %cst_9 : f32 to vector<8x1xf32>
    %28 = arith.addf %26, %27 : vector<8x1xf32>
    %29 = vector.broadcast %28 : vector<8x1xf32> to vector<8x128xf32>
    %30 = arith.divf %25, %29 : vector<8x128xf32>
    %31 = vector.broadcast %8 : vector<1x128xf32> to vector<8x128xf32>
    %32 = arith.addf %30, %31 : vector<8x128xf32>
    %33 = arith.truncf %32 : vector<8x128xf32> to vector<8x128xbf16>
    %c0_10 = arith.constant 0 : index
    %c0_11 = arith.constant 0 : index
    %34 = vector.load %arg2[%c0_10, %c0_11] : memref<128x128xbf16, #tpu.memory_space<vmem>>, vector<128x128xbf16>
    %cst_12 = arith.constant dense<0.000000e+00> : vector<8x128xf32>
    %35 = tpu.matmul %33, %34, %cst_12 {dimension_numbers = #tpu.dot_dimension_numbers<[1], [0], [0], [1], [0, 0, 1, 1], [], []>} : vector<8x128xbf16>, vector<128x128xbf16>, vector<8x128xf32> -> vector<8x128xf32>
    %c0_13 = arith.constant 0 : index
    %c0_14 = arith.constant 0 : index
    %36 = vector.load %arg3[%c0_13, %c0_14] : memref<1x128xf32, #tpu.memory_space<vmem>>, vector<1x128xf32>
    %37 = vector.broadcast %36 : vector<1x128xf32> to vector<8x128xf32>
    %38 = arith.addf %35, %37 : vector<8x128xf32>
    %c0_15 = arith.constant 0 : index
    %c0_16 = arith.constant 0 : index
    %39 = vector.load %arg4[%c0_15, %c0_16] : memref<128x128xbf16, #tpu.memory_space<vmem>>, vector<128x128xbf16>
    %cst_17 = arith.constant dense<0.000000e+00> : vector<8x128xf32>
    %40 = tpu.matmul %33, %39, %cst_17 {dimension_numbers = #tpu.dot_dimension_numbers<[1], [0], [0], [1], [0, 0, 1, 1], [], []>} : vector<8x128xbf16>, vector<128x128xbf16>, vector<8x128xf32> -> vector<8x128xf32>
    %c0_18 = arith.constant 0 : index
    %c0_19 = arith.constant 0 : index
    %41 = vector.load %arg5[%c0_18, %c0_19] : memref<1x128xf32, #tpu.memory_space<vmem>>, vector<1x128xf32>
    %42 = vector.broadcast %41 : vector<1x128xf32> to vector<8x128xf32>
    %43 = arith.addf %40, %42 : vector<8x128xf32>
    %c0_20 = arith.constant 0 : index
    %c0_21 = arith.constant 0 : index
    %44 = vector.load %arg6[%c0_20, %c0_21] : memref<128x128xbf16, #tpu.memory_space<vmem>>, vector<128x128xbf16>
    %cst_22 = arith.constant dense<0.000000e+00> : vector<8x128xf32>
    %45 = tpu.matmul %33, %44, %cst_22 {dimension_numbers = #tpu.dot_dimension_numbers<[1], [0], [0], [1], [0, 0, 1, 1], [], []>} : vector<8x128xbf16>, vector<128x128xbf16>, vector<8x128xf32> -> vector<8x128xf32>
    %c0_23 = arith.constant 0 : index
    %c0_24 = arith.constant 0 : index
    %46 = vector.load %arg7[%c0_23, %c0_24] : memref<1x128xf32, #tpu.memory_space<vmem>>, vector<1x128xf32>
    %47 = vector.broadcast %46 : vector<1x128xf32> to vector<8x128xf32>
    %48 = arith.addf %45, %47 : vector<8x128xf32>
    %cst_25 = arith.constant 2.500000e-01 : f32
    %49 = vector.broadcast %cst_25 : f32 to vector<8x128xf32>
    %50 = arith.mulf %38, %49 : vector<8x128xf32>
    %51 = vector.shape_cast %50 : vector<8x128xf32> to vector<1x8x4x32xf32>
    %52 = tpu.transpose %51, [0, 2, 1, 3] : vector<1x8x4x32xf32> -> vector<1x4x8x32xf32>
    %53 = vector.shape_cast %52 : vector<1x4x8x32xf32> to vector<4x8x32xf32>
    %54 = arith.truncf %53 : vector<4x8x32xf32> to vector<4x8x32xbf16>
    %55 = vector.shape_cast %43 : vector<8x128xf32> to vector<1x8x4x32xf32>
    %56 = tpu.transpose %55, [0, 2, 1, 3] : vector<1x8x4x32xf32> -> vector<1x4x8x32xf32>
    %57 = vector.shape_cast %56 : vector<1x4x8x32xf32> to vector<4x8x32xf32>
    %58 = arith.truncf %57 : vector<4x8x32xf32> to vector<4x8x32xbf16>
    %59 = vector.shape_cast %48 : vector<8x128xf32> to vector<1x8x4x32xf32>
    %60 = tpu.transpose %59, [0, 2, 1, 3] : vector<1x8x4x32xf32> -> vector<1x4x8x32xf32>
    %61 = vector.shape_cast %60 : vector<1x4x8x32xf32> to vector<4x8x32xf32>
    %62 = arith.truncf %61 : vector<4x8x32xf32> to vector<4x8x32xbf16>
    "tpu.trace_start"() <{level = 10 : i32, message = "bqd,bkd->bqk"}> : () -> ()
    %cst_26 = arith.constant dense<0.000000e+00> : vector<4x8x8xf32>
    %63 = tpu.matmul %54, %58, %cst_26 {dimension_numbers = #tpu.dot_dimension_numbers<[2], [2], [1], [1], [0, 0, 0, 1, 1, 1], [0], [0]>} : vector<4x8x32xbf16>, vector<4x8x32xbf16>, vector<4x8x8xf32> -> vector<4x8x8xf32>
    "tpu.trace_stop"() : () -> ()
    %cst_27 = arith.constant dense<0xFF800000> : vector<4x8xf32>
    %64 = vector.multi_reduction <maximumf>, %63, %cst_27 [2] : vector<4x8x8xf32> to vector<4x8xf32>
    %65 = vector.shape_cast %64 : vector<4x8xf32> to vector<4x8x1xf32>
    %66 = vector.broadcast %65 : vector<4x8x1xf32> to vector<4x8x8xf32>
    %67 = arith.subf %63, %66 : vector<4x8x8xf32>
    %68 = math.exp %67 : vector<4x8x8xf32>
    %cst_28 = arith.constant dense<0.000000e+00> : vector<4x8xf32>
    %69 = vector.multi_reduction <add>, %68, %cst_28 [2] : vector<4x8x8xf32> to vector<4x8xf32>
    %70 = vector.shape_cast %69 : vector<4x8xf32> to vector<4x8x1xf32>
    %71 = tpu.reciprocal %70 {approx = true} : vector<4x8x1xf32> -> vector<4x8x1xf32>
    %72 = vector.broadcast %71 : vector<4x8x1xf32> to vector<4x8x8xf32>
    %73 = arith.mulf %68, %72 : vector<4x8x8xf32>
    %74 = arith.truncf %73 : vector<4x8x8xf32> to vector<4x8x8xbf16>
    "tpu.trace_start"() <{level = 10 : i32, message = "bqk,bkd->bqd"}> : () -> ()
    %cst_29 = arith.constant dense<0.000000e+00> : vector<4x8x32xf32>
    %75 = tpu.matmul %74, %62, %cst_29 {dimension_numbers = #tpu.dot_dimension_numbers<[2], [1], [1], [2], [0, 0, 0, 1, 1, 2], [0], [0]>} : vector<4x8x8xbf16>, vector<4x8x32xbf16>, vector<4x8x32xf32> -> vector<4x8x32xf32>
    "tpu.trace_stop"() : () -> ()
    %76 = vector.shape_cast %75 : vector<4x8x32xf32> to vector<1x4x8x32xf32>
    %77 = tpu.transpose %76, [0, 2, 1, 3] : vector<1x4x8x32xf32> -> vector<1x8x4x32xf32>
    %78 = vector.shape_cast %77 : vector<1x8x4x32xf32> to vector<8x128xf32>
    %79 = arith.truncf %78 : vector<8x128xf32> to vector<8x128xbf16>
    %c0_30 = arith.constant 0 : index
    %c0_31 = arith.constant 0 : index
    %80 = vector.load %arg8[%c0_30, %c0_31] : memref<128x128xbf16, #tpu.memory_space<vmem>>, vector<128x128xbf16>
    %cst_32 = arith.constant dense<0.000000e+00> : vector<8x128xf32>
    %81 = tpu.matmul %79, %80, %cst_32 {dimension_numbers = #tpu.dot_dimension_numbers<[1], [0], [0], [1], [0, 0, 1, 1], [], []>} : vector<8x128xbf16>, vector<128x128xbf16>, vector<8x128xf32> -> vector<8x128xf32>
    %82 = arith.addf %1, %81 : vector<8x128xf32>
    %c0_33 = arith.constant 0 : index
    %c0_34 = arith.constant 0 : index
    %83 = vector.load %arg9[%c0_33, %c0_34] : memref<1x128xf32, #tpu.memory_space<vmem>>, vector<1x128xf32>
    %84 = vector.broadcast %83 : vector<1x128xf32> to vector<8x128xf32>
    %85 = arith.addf %82, %84 : vector<8x128xf32>
    %c0_35 = arith.constant 0 : index
    %c0_36 = arith.constant 0 : index
    %86 = vector.load %arg12[%c0_35, %c0_36] : memref<1x128xf32, #tpu.memory_space<vmem>>, vector<1x128xf32>
    %c0_37 = arith.constant 0 : index
    %c0_38 = arith.constant 0 : index
    %87 = vector.load %arg13[%c0_37, %c0_38] : memref<1x128xf32, #tpu.memory_space<vmem>>, vector<1x128xf32>
    %cst_39 = arith.constant dense<0.000000e+00> : vector<8xf32>
    %88 = vector.multi_reduction <add>, %85, %cst_39 [1] : vector<8x128xf32> to vector<8xf32>
    %89 = vector.shape_cast %88 : vector<8xf32> to vector<8x1xf32>
    %cst_40 = arith.constant 1.562500e-02 : f32
    %90 = vector.broadcast %cst_40 : f32 to vector<8x1xf32>
    %91 = arith.mulf %89, %90 : vector<8x1xf32>
    %92 = vector.broadcast %91 : vector<8x1xf32> to vector<8x128xf32>
    %93 = arith.subf %85, %92 : vector<8x128xf32>
    %94 = vector.broadcast %6 : vector<1x128xf32> to vector<8x128xf32>
    %95 = arith.mulf %93, %94 : vector<8x128xf32>
    %96 = arith.mulf %95, %95 : vector<8x128xf32>
    %cst_41 = arith.constant dense<0.000000e+00> : vector<8xf32>
    %97 = vector.multi_reduction <add>, %96, %cst_41 [1] : vector<8x128xf32> to vector<8xf32>
    %98 = vector.shape_cast %97 : vector<8xf32> to vector<8x1xf32>
    %cst_42 = arith.constant 0.0158730168 : f32
    %99 = vector.broadcast %cst_42 : f32 to vector<8x1xf32>
    %100 = arith.mulf %98, %99 : vector<8x1xf32>
    %101 = vector.broadcast %91 : vector<8x1xf32> to vector<8x128xf32>
    %102 = arith.subf %85, %101 : vector<8x128xf32>
    %103 = vector.broadcast %86 : vector<1x128xf32> to vector<8x128xf32>
    %104 = arith.mulf %103, %102 : vector<8x128xf32>
    %105 = math.sqrt %100 : vector<8x1xf32>
    %cst_43 = arith.constant 9.99999997E-7 : f32
    %106 = vector.broadcast %cst_43 : f32 to vector<8x1xf32>
    %107 = arith.addf %105, %106 : vector<8x1xf32>
    %108 = vector.broadcast %107 : vector<8x1xf32> to vector<8x128xf32>
    %109 = arith.divf %104, %108 : vector<8x128xf32>
    %110 = vector.broadcast %87 : vector<1x128xf32> to vector<8x128xf32>
    %111 = arith.addf %109, %110 : vector<8x128xf32>
    %112 = arith.truncf %111 : vector<8x128xf32> to vector<8x128xbf16>
    %c0_44 = arith.constant 0 : index
    %c0_45 = arith.constant 0 : index
    %113 = vector.load %arg14[%c0_44, %c0_45] : memref<128x128xbf16, #tpu.memory_space<vmem>>, vector<128x128xbf16>
    %cst_46 = arith.constant dense<0.000000e+00> : vector<8x128xf32>
    %114 = tpu.matmul %112, %113, %cst_46 {dimension_numbers = #tpu.dot_dimension_numbers<[1], [0], [0], [1], [0, 0, 1, 1], [], []>} : vector<8x128xbf16>, vector<128x128xbf16>, vector<8x128xf32> -> vector<8x128xf32>
    %c0_47 = arith.constant 0 : index
    %c0_48 = arith.constant 0 : index
    %115 = vector.load %arg15[%c0_47, %c0_48] : memref<1x128xf32, #tpu.memory_space<vmem>>, vector<1x128xf32>
    %116 = vector.broadcast %115 : vector<1x128xf32> to vector<8x128xf32>
    %117 = arith.addf %114, %116 : vector<8x128xf32>
    %cst_49 = arith.constant 0.000000e+00 : f32
    %118 = vector.broadcast %cst_49 : f32 to vector<8x128xf32>
    %119 = arith.maximumf %117, %118 : vector<8x128xf32>
    %120 = arith.truncf %119 : vector<8x128xf32> to vector<8x128xbf16>
    %c0_50 = arith.constant 0 : index
    %c0_51 = arith.constant 0 : index
    %121 = vector.load %arg16[%c0_50, %c0_51] : memref<128x128xbf16, #tpu.memory_space<vmem>>, vector<128x128xbf16>
    %cst_52 = arith.constant dense<0.000000e+00> : vector<8x128xf32>
    %122 = tpu.matmul %120, %121, %cst_52 {dimension_numbers = #tpu.dot_dimension_numbers<[1], [0], [0], [1], [0, 0, 1, 1], [], []>} : vector<8x128xbf16>, vector<128x128xbf16>, vector<8x128xf32> -> vector<8x128xf32>
    %123 = arith.addf %85, %122 : vector<8x128xf32>
    %c0_53 = arith.constant 0 : index
    %c0_54 = arith.constant 0 : index
    %124 = vector.load %arg17[%c0_53, %c0_54] : memref<1x128xf32, #tpu.memory_space<vmem>>, vector<1x128xf32>
    %125 = vector.broadcast %124 : vector<1x128xf32> to vector<8x128xf32>
    %126 = arith.addf %123, %125 : vector<8x128xf32>
    %127 = vector.shape_cast %126 : vector<8x128xf32> to vector<1x8x128xf32>
    %c0_55 = arith.constant 0 : index
    %c0_56 = arith.constant 0 : index
    %c0_57 = arith.constant 0 : index
    %128 = vector.load %arg18[%c0_55, %c0_56, %c0_57] : memref<1x8x128xf32, #tpu.memory_space<vmem>>, vector<1x8x128xf32>
    tpu.vector_store %arg18[%c0_55, %c0_56, %c0_57], %127 {strides = array<i32>} : memref<1x8x128xf32, #tpu.memory_space<vmem>>, vector<1x8x128xf32>,
    return
  }
  func.func @transform_0(%arg0: i32) -> (i32, i32, i32) {
    %c0_i32 = arith.constant 0 : i32
    %c0_i32_0 = arith.constant 0 : i32
    %c0_i32_1 = arith.constant 0 : i32
    return %arg0, %c0_i32, %c0_i32_0 : i32, i32, i32
  }
  func.func @transform_1(%arg0: i32) -> (i32, i32) {
    %c0_i32 = arith.constant 0 : i32
    %c0_i32_0 = arith.constant 0 : i32
    %c0_i32_1 = arith.constant 0 : i32
    return %c0_i32, %c0_i32_0 : i32, i32
  }
  func.func @transform_2(%arg0: i32) -> (i32, i32) {
    %c0_i32 = arith.constant 0 : i32
    %c0_i32_0 = arith.constant 0 : i32
    %c0_i32_1 = arith.constant 0 : i32
    return %c0_i32, %c0_i32_0 : i32, i32
  }
  func.func @transform_3(%arg0: i32) -> (i32, i32) {
    %c0_i32 = arith.constant 0 : i32
    %c0_i32_0 = arith.constant 0 : i32
    %c0_i32_1 = arith.constant 0 : i32
    return %c0_i32, %c0_i32_0 : i32, i32
  }
  func.func @transform_4(%arg0: i32) -> (i32, i32) {
    %c0_i32 = arith.constant 0 : i32
    %c0_i32_0 = arith.constant 0 : i32
    %c0_i32_1 = arith.constant 0 : i32
    return %c0_i32, %c0_i32_0 : i32, i32
  }
  func.func @transform_5(%arg0: i32) -> (i32, i32) {
    %c0_i32 = arith.constant 0 : i32
    %c0_i32_0 = arith.constant 0 : i32
    %c0_i32_1 = arith.constant 0 : i32
    return %c0_i32, %c0_i32_0 : i32, i32
  }
  func.func @transform_6(%arg0: i32) -> (i32, i32) {
    %c0_i32 = arith.constant 0 : i32
    %c0_i32_0 = arith.constant 0 : i32
    %c0_i32_1 = arith.constant 0 : i32
    return %c0_i32, %c0_i32_0 : i32, i32
  }
  func.func @transform_7(%arg0: i32) -> (i32, i32) {
    %c0_i32 = arith.constant 0 : i32
    %c0_i32_0 = arith.constant 0 : i32
    %c0_i32_1 = arith.constant 0 : i32
    return %c0_i32, %c0_i32_0 : i32, i32
  }
  func.func @transform_8(%arg0: i32) -> (i32, i32) {
    %c0_i32 = arith.constant 0 : i32
    %c0_i32_0 = arith.constant 0 : i32
    %c0_i32_1 = arith.constant 0 : i32
    return %c0_i32, %c0_i32_0 : i32, i32
  }
  func.func @transform_9(%arg0: i32) -> (i32, i32) {
    %c0_i32 = arith.constant 0 : i32
    %c0_i32_0 = arith.constant 0 : i32
    %c0_i32_1 = arith.constant 0 : i32
    return %c0_i32, %c0_i32_0 : i32, i32
  }
  func.func @transform_10(%arg0: i32) -> (i32, i32) {
    %c0_i32 = arith.constant 0 : i32
    %c0_i32_0 = arith.constant 0 : i32
    %c0_i32_1 = arith.constant 0 : i32
    return %c0_i32, %c0_i32_0 : i32, i32
  }
  func.func @transform_11(%arg0: i32) -> (i32, i32) {
    %c0_i32 = arith.constant 0 : i32
    %c0_i32_0 = arith.constant 0 : i32
    %c0_i32_1 = arith.constant 0 : i32
    return %c0_i32, %c0_i32_0 : i32, i32
  }
  func.func @transform_12(%arg0: i32) -> (i32, i32) {
    %c0_i32 = arith.constant 0 : i32
    %c0_i32_0 = arith.constant 0 : i32
    %c0_i32_1 = arith.constant 0 : i32
    return %c0_i32, %c0_i32_0 : i32, i32
  }
  func.func @transform_13(%arg0: i32) -> (i32, i32) {
    %c0_i32 = arith.constant 0 : i32
    %c0_i32_0 = arith.constant 0 : i32
    %c0_i32_1 = arith.constant 0 : i32
    return %c0_i32, %c0_i32_0 : i32, i32
  }
  func.func @transform_14(%arg0: i32) -> (i32, i32) {
    %c0_i32 = arith.constant 0 : i32
    %c0_i32_0 = arith.constant 0 : i32
    %c0_i32_1 = arith.constant 0 : i32
    return %c0_i32, %c0_i32_0 : i32, i32
  }
  func.func @transform_15(%arg0: i32) -> (i32, i32) {
    %c0_i32 = arith.constant 0 : i32
    %c0_i32_0 = arith.constant 0 : i32
    %c0_i32_1 = arith.constant 0 : i32
    return %c0_i32, %c0_i32_0 : i32, i32
  }
  func.func @transform_16(%arg0: i32) -> (i32, i32) {
    %c0_i32 = arith.constant 0 : i32
    %c0_i32_0 = arith.constant 0 : i32
    %c0_i32_1 = arith.constant 0 : i32
    return %c0_i32, %c0_i32_0 : i32, i32
  }
  func.func @transform_17(%arg0: i32) -> (i32, i32, i32) {
    %c0_i32 = arith.constant 0 : i32
    %c0_i32_0 = arith.constant 0 : i32
    %c0_i32_1 = arith.constant 0 : i32
    return %arg0, %c0_i32, %c0_i32_0 : i32, i32, i32
  }
}

</mosaic_0001>

<bundles_post_ra>
// kernel: tpu_custom_call.1
= control target key start
LH: loop header
LB: loop body
LE: loop exit
PB: predicated region body
PF: predicated region fallthrough
CT: control target
= control target key end

     0   :  { %s3396_s0 = inlined_call_operand.hbm [shape: f32[2,8,128], index: 0, kind: input, shape index: {}]   ;;  %s3397_s1 = inlined_call_operand.hbm [shape: bf16[128,128], index: 1, kind: input, shape index: {}]   ;;  %s3398_s2 = inlined_call_operand.vmem [shape: f32[1,128], index: 2, kind: input, shape index: {}]   ;;  %s3399_s3 = inlined_call_operand.hbm [shape: bf16[128,128], index: 3, kind: input, shape index: {}]   ;;  %s3400_s4 = inlined_call_operand.vmem [shape: f32[1,128], index: 4, kind: input, shape index: {}]   ;;  %s3401_s5 = inlined_call_operand.hbm [shape: bf16[128,128], index: 5, kind: input, shape index: {}]   ;;  %s3402_s6 = inlined_call_operand.vmem [shape: f32[1,128], index: 6, kind: input, shape index: {}]   ;;  %s3403_s7 = inlined_call_operand.hbm [shape: bf16[128,128], index: 7, kind: input, shape index: {}]   ;;  %s3404_s8 = inlined_call_operand.vmem [shape: f32[1,128], index: 8, kind: input, shape index: {}]   ;;  %s3405_s9 = inlined_call_operand.vmem [shape: f32[1,128], index: 9, kind: input, shape index: {}]   ;;  %s3406_s10 = inlined_call_operand.vmem [shape: f32[1,128], index: 10, kind: input, shape index: {}]   ;;  %s3407_s11 = inlined_call_operand.vmem [shape: f32[1,128], index: 11, kind: input, shape index: {}]   ;;  %s3408_s12 = inlined_call_operand.vmem [shape: f32[1,128], index: 12, kind: input, shape index: {}]   ;;  %s3409_s13 = inlined_call_operand.hbm [shape: bf16[128,128], index: 13, kind: input, shape index: {}]   ;;  %s3410_s14 = inlined_call_operand.vmem [shape: f32[1,128], index: 14, kind: input, shape index: {}]   ;;  %s3411_s15 = inlined_call_operand.hbm [shape: bf16[128,128], index: 15, kind: input, shape index: {}]   ;;  %s3412_s16 = inlined_call_operand.vmem [shape: f32[1,128], index: 16, kind: input, shape index: {}]   ;;  %s3413_s17 = inlined_call_operand.hbm [shape: f32[2,8,128], index: 17, kind: output, shape index: {}]  }
   0x1   :  { %3417 = sst [smem:[#allocation22_spill]] %s3396_s0 }
   0x2   :  { %3418 = sst [smem:[#allocation23_spill]] %s3397_s1 }
   0x3   :  { %3419 = sst [smem:[#allocation24_spill]] %s3399_s3 }
   0x4   :  { %3420 = sst [smem:[#allocation25_spill]] %s3401_s5 }
   0x5   :  { %3421 = sst [smem:[#allocation26_spill]] %s3403_s7 }
   0x6   :  { %3422 = sst [smem:[#allocation27_spill]] %s3408_s12 }
   0x7   :  { %3423 = sst [smem:[#allocation28_spill]] %s3409_s13 }
   0x8   :  { %3424 = sst [smem:[#allocation29_spill]] %s3410_s14 }
   0x9   :  { %3425 = sst [smem:[#allocation30_spill]] %s3411_s15 }
   0xa   :  { %3426 = sst [smem:[#allocation31_spill]] %s3412_s16 }
   0xb   :  { %3427 = sst [smem:[#allocation32_spill]] %s3413_s17 }
   0xc   :  { %22 = vsyncpa [#allocation3], 0 }
   0xd   :  { %24 = vsyncpa [#allocation3 + $0x1], 0 }
   0xe   :  { %25 = vsyncpa [#allocation6], 0 }
   0xf   :  { %26 = vsyncpa [#allocation9], 0 }
  0x10   :  { %27 = vsyncpa [#allocation12], 0 }
  0x11   :  { %28 = vsyncpa [#allocation4], 0 }
  0x12   :  { %30 = vsyncpa [#allocation4 + $0x1], 0  ;;  %s2926_s24 = smov 0   ;;  %s2928_s25 = smov 0  }
  0x13   :  { %s2930_s26 = smov 0   ;;  %s2932_s27 = smov 0  }
  0x14 LB: > { %3428 = sst [smem:[#allocation20_spill]] %s2816_s26  ;;  %s2950_s18 = sadd.s32 4294967295, %s2820_s27   ;;  %s2820_s27 = sphi %s2932_s27, %s3453_s27   ;;  %s2816_s26 = sphi %s2930_s26, %s3450_s26   ;;  %s2812_s25 = sphi %s2928_s25, %s3452_s25   ;;  %s2808_s24 = sphi %s2926_s24, %s3451_s24  }
  0x15   : > { %s3429_s0 = sld [smem:[#allocation23_spill]]  ;;  %p2110_p0 = scmp.ge.s32.totalorder %s2820_s27, 1 }
  0x16   : > { %p57_p1 = scmp.eq.s32.totalorder %s2950_s18, 0  ;;  %p429_p2 = scmp.lt.s32.totalorder %s2820_s27, 3 }
  0x17   : > { %s2822_s1 = smov [#allocation5]   ;;  %s3431_s5 = sld [smem:[#allocation25_spill]] }
  0x18   : > { %p2955_p3 = pnand %p2110_p0, %p429_p2  ;;  %s442_s20 = sshll.u32 %s2822_s1, 4  ;;  %s443_s20 = int_to_ptr.vmem [resolvable:$true] %s442_s20 }
  0x19   : > { %s3433_s13 = sld [smem:[#allocation28_spill]]  ;;  %s2823_s16 = smov [#allocation8]  }
  0x1a   : > { %p2410_p4 = pneg %p2955_p3  ;;  %s476_s17 = sshll.u32 %s2823_s16, 4  ;;  %s477_s17 = int_to_ptr.vmem [resolvable:$true] %s476_s17 }
  0x1b   : > { %s440_s30 = sshll.u32 %s3429_s0, 4  ;;  %s2824_s14 = smov 64   ;;  %s441_s30 = int_to_ptr.hbm [resolvable:$true] %s440_s30 }
  0x1c   : > { %p2967_p6 = pnand %p2410_p4, %p57_p1  ;;  %s2825_s12 = smov 4  }
  0x1d   : > { %s474_s23 = sshll.u32 %s3431_s5, 4  ;;  %s3434_s3 = sld [smem:[#allocation24_spill]]  ;;  %s475_s23 = int_to_ptr.hbm [resolvable:$true] %s474_s23 }
  0x1e   : > { %2413 = dma.hbm_to_vmem [thread:$0]  (!%p2967_p6), %s441_s30, 1024, %s443_s20, [#allocation6], %s2824_s14, %s2824_s14, %s2825_s12  }
  0x1f   : > { %s520_s1 = sshll.u32 %s3433_s13, 4  ;;  %s2826_s16 = smov [#allocation11]   ;;  %s521_s1 = int_to_ptr.hbm [resolvable:$true] %s520_s1 }
  0x20   : > { %2419 = dma.hbm_to_vmem [thread:$0]  (!%p2967_p6), %s475_s23, 1024, %s477_s17, [#allocation9], %s2824_s14, %s2824_s14, %s2825_s12  }
  0x21   : > { %s522_s0 = sshll.u32 %s2826_s16, 4  ;;  %s2827_s30 = smov [#allocation7]   ;;  %s523_s0 = int_to_ptr.vmem [resolvable:$true] %s522_s0 }
  0x22   : > { %2425 = dma.hbm_to_vmem [thread:$0]  (!%p2967_p6), %s521_s1, 1024, %s523_s0, [#allocation12], %s2824_s14, %s2824_s14, %s2825_s12  }
  0x23   : > { %s457_s29 = sshll.u32 %s3434_s3, 4  ;;  %s459_s20 = sshll.u32 %s2827_s30, 4  ;;  %s458_s29 = int_to_ptr.hbm [resolvable:$true] %s457_s29  ;;  %s460_s20 = int_to_ptr.vmem [resolvable:$true] %s459_s20 }
  0x24   : > { %s3435_s7 = sld [smem:[#allocation26_spill]]  ;;  %s2828_s16 = smov [#allocation10]  }
  0x25   : > { %2416 = dma.hbm_to_vmem [thread:$0]  (!%p2967_p6), %s458_s29, 1024, %s460_s20, [#allocation6], %s2824_s14, %s2824_s14, %s2825_s12  }
  0x26   : > { %s3436_s15 = sld [smem:[#allocation30_spill]]  ;;  %s493_s5 = sshll.u32 %s2828_s16, 4  ;;  %s494_s5 = int_to_ptr.vmem [resolvable:$true] %s493_s5 }
  0x27   : > { %s2829_s29 = smov [#allocation13]   ;;  %s2109_s30 = sadd.s32 4294967294, %s2820_s27  }
  0x28   : > { %s539_s0 = sshll.u32 %s2829_s29, 4  ;;  %s3015_s20 = sadd.s32 1, %s2820_s27   ;;  %s540_s0 = int_to_ptr.vmem [resolvable:$true] %s539_s0 }
  0x29   : > { %s40_s17 = ssub.s32 %s2820_s27, %s3015_s20  ;;  %s43_s21 = sadd.s32 1, %s2816_s26 }
  0x2a   : > { %s491_s23 = sshll.u32 %s3435_s7, 4  ;;  %p41_p7 = scmp.eq.s32.totalorder %s40_s17, 0  ;;  %s492_s23 = int_to_ptr.hbm [resolvable:$true] %s491_s23 }
  0x2b   : > { %2422 = dma.hbm_to_vmem [thread:$0]  (!%p2967_p6), %s492_s23, 1024, %s494_s5, [#allocation9], %s2824_s14, %s2824_s14, %s2825_s12  }
  0x2c   : > { %s537_s22 = sshll.u32 %s3436_s15, 4  ;;  %p50_p8 = scmp.ne.s32.totalorder %s2816_s26, %s2812_s25  ;;  %s538_s22 = int_to_ptr.hbm [resolvable:$true] %s537_s22 }
  0x2d   : > { %2428 = dma.hbm_to_vmem [thread:$0]  (!%p2967_p6), %s538_s22, 1024, %s540_s0, [#allocation12], %s2824_s14, %s2824_s14, %s2825_s12  }
  0x2e   : > { %p51_p9 = scmp.eq.s32.totalorder %s2820_s27, 0  ;;  %p56_p10 = scmp.ne.s32.totalorder %s2812_s25, %s2808_s24 }
  0x2f   : > { %s3026_s23 = scalar_select %p41_p7, %s2816_s26, %s43_s21  }
  0x30   : > { %p3028_p11 = por %p51_p9, %p50_p8  ;;  %p3034_p12 = por %p57_p1, %p56_p10 }
  0x31   : > { %3437 = sst [smem:[#allocation21_spill]] %s3026_s23  ;;  %p416_p13 = scmp.eq.s32.totalorder %s2950_s18, 1 }
  0x32   : > { %p422_p0 = scmp.eq.s32.totalorder %s2109_s30, 1  ;;  %p2443_p2 = scmp.lt.s32.totalorder %s2820_s27, 2 }
  0x33   : > { %s556_s14 = sand.u32 1, %s2816_s26   ;;  %p3041_p4 = por %p416_p13, %p50_p8 }
  0x34   : > { %p3045_p6 = por %p422_p0, %p56_p10  ;;  %s2118_s16 = sshll.u32 %s556_s14, 3 }
  0x35   : > { %s2119_s5 = sshll.u32 %s2820_s27, 3  ;;  %s3442_s17 = sld [smem:[#allocation22_spill]] }
  0x36   : > { %s560_s3 = scalar_lea.vmem [#allocation2], %s2118_s16  ;;  %p3055_p7 = pnand %p2443_p2, %p3028_p11 }
  0x37   : > { %s568_s7 = sshll.u32 %s560_s3, 4  ;;  %s557_s15 = scalar_lea.sflag [#allocation3], %s556_s14  ;;  %s569_s7 = int_to_ptr.vmem [resolvable:$true] %s568_s7 }
  0x38   : > { %p2716_p9 = pneg %p3055_p7 }
  0x3b   : > { %s564_s21 = scalar_lea.hbm %s3442_s17, %s2119_s5  ;;  %s2719_s5 = scalar_lea.hbm %s3442_s17, 16 }
  0x3c   : > { %s566_s13 = sshll.u32 %s564_s21, 4  ;;  %s567_s13 = int_to_ptr.hbm [resolvable:$true] %s566_s13 }
  0x3d   : > { %s2712_s23 = sshra.s32 %s567_s13, 4  ;;  %s2713_s23 = int_to_ptr.hbm [resolvable:$true] %s2712_s23 }
  0x3e   : > { %s2714_s26 = scalar_lea.hbm %s2713_s23, 8  ;;  %p2720_p11 = scmp.lt.s32.totalorder %s2713_s23, %s3442_s17 }
  0x3f   : > { %p2715_p8 = scmp.ne.s32.totalorder %s2713_s23, %s2714_s26  ;;  %p2721_p0 = scmp.lt.s32.totalorder %s2719_s5, %s2714_s26 }
  0x41   : > { %p2717_p10 = pnand %p2716_p9, %p2715_p8  ;;  %p2722_p2 = por %p2721_p0, %p2720_p11 }
  0x43   : > { %p2718_p13 = pneg %p2717_p10 }
  0x45   : > { %p2723_p5 = pnand %p2722_p2, %p2718_p13 }
  0x47   : > { %2726 = shalt.err (!%p2723_p5)
}
  0x48   : > { %2432 = dma.hbm_to_vmem [thread:$0]  (!%p3055_p7), %s567_s13, 128, %s569_s7, %s557_s15  }
  0x49   : > { %577 = sbr.rel (%p2955_p3) target bundleno = 2041 (0x7f9), region = 88  ;;  %s3072_s14 = sand.u32 (!%p2955_p3), 1, %s2812_s25  }
  0x4a   : > { %s2121_s0 = sshll.u32 (!%p2955_p3), %s3072_s14, 3  ;;  %s580_s21 = scalar_lea.sflag (!%p2955_p3), [#allocation3], %s3072_s14 }
  0x4b   : > { %s3078_s26 = scalar_lea.vmem (!%p2955_p3), [#allocation2], %s2121_s0 }
  0x4e   : > { %2787 = dma.done.wait (%p3034_p12), %s580_s21, 128  }
  0x4f   : > { %2789 = vsyncadd (%p3034_p12), %s580_s21, 4294967168 }
  0x50   : > { %2791 = dma.done.wait (%p57_p1), [#allocation6], 2048  }
  0x51   : > { %2793 = vsyncadd (%p57_p1), [#allocation6], 4294965248 }
  0x52   : > { %2795 = dma.done.wait (%p57_p1), [#allocation9], 2048  }
  0x53   : > { %2797 = vsyncadd (%p57_p1), [#allocation9], 4294965248 }
  0x54   : > { %2799 = dma.done.wait (%p57_p1), [#allocation12], 2048  }
  0x55   : > { %2801 = vsyncadd (%p57_p1), [#allocation12], 4294965248  ;;  %v666_v0 = vld [vmem:[%s3078_s26] sm:$0xff]  ;;  %v667_v1 = vlaneseq  ;;  %v2830_v5 = vmov 0.0   ;;  %v2339_v16 = vld [vmem:[#allocation5 + $0x28] sm:$0xff]  ;;  %s2831_s3 = smov 96  }
  0x56   : > { %674 = vadd.xlane.f32.xlu0 %v666_v0  ;;  %v2341_v10 = vld [vmem:[#allocation5 + $0x38] sm:$0xff]  ;;  %v2340_v13 = vld [vmem:[#allocation5 + $0x30] sm:$0xff]  ;;  %v2347_v17 = vld [vmem:[#allocation7 + $0x28] sm:$0xff]  ;;  %s2832_s5 = smov 64   ;;  %s2833_s29 = smov 32   ;;  %vm975_vm7 = vcmask 1047556  }
  0x57   : > { %v668_v2 = vand.u32 127, %v667_v1  ;;  %v2349_v11 = vld [vmem:[#allocation7 + $0x38] sm:$0xff]  ;;  %788 = vmatpush.bf16.msra.mxu0 %v2341_v10  ;;  %v2348_v14 = vld [vmem:[#allocation7 + $0x30] sm:$0xff]  ;;  %v2355_v18 = vld [vmem:[#allocation8 + $0x28] sm:$0xff]  ;;  %vm1337_vm8 = vcmask 261120   ;;  %vm1414_vm9 = vcmask 64512  }
  0x58   : > { %v2357_v12 = vld [vmem:[#allocation8 + $0x38] sm:$0xff]  ;;  %869 = vmatpush.bf16.msra.mxu1 %v2349_v11  ;;  %v2356_v15 = vld [vmem:[#allocation8 + $0x30] sm:$0xff]  ;;  %v2338_v19 = vld [vmem:[#allocation5 + $0x20] sm:$0xff]  ;;  %vm1466_vm10 = vcmask 1043456   ;;  %vm1663_vm11 = vcmask 523264   ;;  %vm1665_vm12 = vcmask 785408  }
  0x59   : > { %vm669_vm0 = vcmp.lt.s32.totalorder %v668_v2, 64  ;;  %950 = vmatpush.bf16.msra.mxu2 %v2357_v12  ;;  %v2346_v20 = vld [vmem:[#allocation7 + $0x20] sm:$0xff]  ;;  %v2337_v22 = vld [vmem:[#allocation5 + $0x18] sm:$0xff]  ;;  %v2336_v27 = vld [vmem:[#allocation5 + $0x10] sm:$0xff]  ;;  %v2834_v12 = vmov 1983009808  }
  0x5a   : > { %v3097_v6 = vsel %vm669_vm0, 1.0, %v2830_v5  ;;  %v2354_v21 = vld [vmem:[#allocation8 + $0x20] sm:$0xff]  ;;  %v2345_v23 = vld [vmem:[#allocation7 + $0x18] sm:$0xff]  ;;  %v2344_v28 = vld [vmem:[#allocation7 + $0x10] sm:$0xff]  ;;  %s3444_s12 = sld [smem:[#allocation27_spill]]  ;;  %s664_s19 = scalar_lea.vmem [#allocation14], %s2121_s0 }
  0x5b   : > { %789 = vmatpush.bf16.msra.mxu0 %v2340_v13  ;;  %v2353_v24 = vld [vmem:[#allocation8 + $0x18] sm:$0xff]  ;;  %v2352_v29 = vld [vmem:[#allocation8 + $0x10] sm:$0xff]  ;;  %v2335_v30 = vld [vmem:[#allocation5 + $0x8] sm:$0xff]  ;;  %v980_v13 = vunpack.c.l.s4 %v2834_v12  ;;  %s3446_s21 = sld [smem:[#allocation32_spill]]  ;;  %s1979_s23 = sshll.u32 %s664_s19, 4  ;;  %s1980_s23 = int_to_ptr.vmem [resolvable:$true] %s1979_s23 }
  0x5c   : > { %870 = vmatpush.bf16.msra.mxu1 %v2348_v14  ;;  %v2343_v31 = vld [vmem:[#allocation7 + $0x8] sm:$0xff]  ;;  %v2334_v35 = vld [vmem:[#allocation5] sm:$0xff]  ;;  %v2497_v51 = vld [vmem:[%s3405_s9] ss:$0 sm:$0xff]  ;;  %s3447_s15 = sld [smem:[#allocation31_spill]] }
  0x5d   : > { %951 = vmatpush.bf16.msra.mxu2 %v2356_v15  ;;  %v2351_v32 = vld [vmem:[#allocation8 + $0x8] sm:$0xff]  ;;  %v2342_v36 = vld [vmem:[#allocation7] sm:$0xff]  ;;  %v2498_v58 = vld [vmem:[%s3406_s10] ss:$0 sm:$0xff] }
  0x5e   : > { %v2350_v37 = vld [vmem:[#allocation8] sm:$0xff]  ;;  %v2499_v63 = vld [vmem:[%s3398_s2] ss:$0 sm:$0xff] }
  0x5f   : > { %790 = vmatpush.bf16.msra.mxu0 %v2339_v16 }
  0x60   : > { %871 = vmatpush.bf16.msra.mxu1 %v2347_v17 }
  0x61   : > { %952 = vmatpush.bf16.msra.mxu2 %v2355_v18  ;;  %s2762_s0 = scalar_lea.hbm %s3446_s21, 16 }
  0x63   : > { %791 = vmatpush.bf16.msra.mxu0 %v2338_v19  ;;  %v3125_v19 = vunpack.c.0.s8 %v980_v13 }
  0x64   : > { %872 = vmatpush.bf16.msra.mxu1 %v2346_v20 }
  0x65   : > { %953 = vmatpush.bf16.msra.mxu2 %v2354_v21 }
  0x67   : > { %792 = vmatpush.bf16.msra.mxu0 %v2337_v22  ;;  %v2835_v22 = vmov 1934713408  }
  0x68   : > { %873 = vmatpush.bf16.msra.mxu1 %v2345_v23  ;;  %v1004_v23 = vunpack.c.l.s4 %v2835_v22 }
  0x69   : > { %954 = vmatpush.bf16.msra.mxu2 %v2353_v24 }
  0x6b   : > { %793 = vmatpush.bf16.msra.mxu0 %v2336_v27 }
  0x6c   : > { %874 = vmatpush.bf16.msra.mxu1 %v2344_v28 }
  0x6d   : > { %955 = vmatpush.bf16.msra.mxu2 %v2352_v29 }
  0x6f   : > { %794 = vmatpush.bf16.msra.mxu0 %v2335_v30 }
  0x70   : > { %875 = vmatpush.bf16.msra.mxu1 %v2343_v31  ;;  %v3132_v31 = vunpack.c.0.s8 %v1004_v23 }
  0x71   : > { %956 = vmatpush.bf16.msra.mxu2 %v2351_v32 }
  0x73   : > { %795 = vmatpush.bf16.msra.mxu0 %v2334_v35 }
  0x74   : > { %876 = vmatpush.bf16.msra.mxu1 %v2342_v36 }
  0x75   : > { %957 = vmatpush.bf16.msra.mxu2 %v2350_v37 }
  0xc9   : > { %v675_v3 = vpop.xlane.xlu0 %674 }
  0xca   : > { %v676_v4 = vmul.f32 0.015625, %v675_v3 }
  0xcc   : > { %v3099_v7 = vsub.f32 %v666_v0, %v676_v4  ;;  %v2500_v0 = vld [vmem:[%s3400_s4] ss:$0 sm:$0xff] }
  0xce   : > { %v678_v8 = vmul.f32 %v3097_v6, %v3099_v7  ;;  %v686_v56 = vmul.f32 %v2497_v51, %v3099_v7 }
  0xd0   : > { %v679_v9 = vmul.f32 %v678_v8, %v678_v8 }
  0xd2   : > { %680 = vadd.xlane.f32.xlu0 %v679_v9 }
 0x145   : > { %v681_v25 = vpop.xlane.xlu0 %680 }
 0x146   : > { %v682_v26 = vmul.f32 0.015873017, %v681_v25 }
 0x148   : > { %2507 = vrsqrt.f32 %v682_v26  ;;  %vm694_vm1 = vcmp.eq.f32.partialorder %v682_v26, inf  ;;  %v697_v43 = vand.u32 2147483648, %v682_v26  ;;  %vm696_vm2 = vcmp.eq.f32.partialorder %v682_v26, 0.0 }
 0x14e   : > { %v2508_v33 = vpop.eup %2507 }
 0x14f   : > { %v688_v34 = vmul.f32 %v2508_v33, %v682_v26 }
 0x151   : > { %v689_v38 = vmul.f32 %v2508_v33, %v688_v34 }
 0x153   : > { %v690_v39 = vmul.f32 0.5, %v689_v38 }
 0x155   : > { %v691_v40 = vsub.f32 1.5, %v690_v39 }
 0x157   : > { %v692_v41 = vmul.f32 %v2508_v33, %v691_v40 }
 0x159   : > { %v693_v42 = vmul.f32 %v692_v41, %v682_v26 }
 0x15b   : > { %v695_v44 = vsel %vm694_vm1, %v682_v26, %v693_v42 }
 0x15c   : > { %v698_v45 = vsel %vm696_vm2, %v697_v43, %v695_v44 }
 0x15d   : > { %v699_v46 = vadd.f32 1e-06, %v698_v45 }
 0x15f   : > { %2509 = vrcp.f32 %v699_v46  ;;  %v711_v50 = vand.u32 2147483648, %v699_v46  ;;  %v709_v53 = vand.u32 2147483647, %v699_v46  ;;  %vm705_vm4 = vweird.f32 %v699_v46 }
 0x161   : > { %v712_v55 = vor.u32 1.1754944e-38, %v711_v50  ;;  %vm710_vm6 = vcmp.eq.f32.partialorder %v709_v53, 8.507059e+37 }
 0x165   : > { %v2510_v47 = vpop.eup %2509 }
 0x166   : > { %v701_v48 = vmul.f32 %v2510_v47, %v699_v46  ;;  %vm706_vm3 = vweird.f32 %v2510_v47 }
 0x167   : > { %vm707_vm5 = vmor %vm705_vm4, %vm706_vm3 }
 0x168   : > { %v702_v49 = vsub.f32 1.0, %v701_v48 }
 0x16a   : > { %v703_v52 = vmul.f32 %v2510_v47, %v702_v49 }
 0x16c   : > { %v704_v54 = vadd.f32 %v2510_v47, %v703_v52 }
 0x16e   : > { %v708_v57 = vsel %vm707_vm5, %v2510_v47, %v704_v54 }
 0x16f   : > { %v713_v59 = vsel %vm710_vm6, %v712_v55, %v708_v57 }
 0x170   : > { %v714_v60 = vmul.f32 %v713_v59, %v686_v56 }
 0x172   : > { %v718_v61 = vadd.f32 %v2498_v58, %v714_v60 }
 0x174   : > { %v719_v62 = vpack.c.bf16 %v718_v61, %v718_v61 }
 0x176   : > { %796 = vmatmul.bf16.vlgmr.msra.gmra.mxu0 %v719_v62  ;;  %877 = vmatmul.bf16.vlgmr.msra.gmra.mxu1 %v719_v62 }
 0x177   : > { %958 = vmatmul.bf16.vlgmr.msra.gmra.mxu2 %v719_v62 }
 0x1f3   : > { %v797_v1 = vpop.f32.mrf.mxu0  ;;  %v878_v2 = vpop.f32.mrf.mxu1 }
 0x1f4   : > { %v798_v3 = vadd.f32 %v2499_v63, %v797_v1  ;;  %v879_v4 = vadd.f32 %v2500_v0, %v878_v2 }
 0x1f6   : > { %v963_v5 = vmul.f32 0.25, %v798_v3  ;;  %1090 = vrot.lane.b32.xlu2 %v879_v4, %s2831_s3  ;;  %1093 = vrot.lane.b32.xlu1 %v879_v4, %s2832_s5  ;;  %v1101_v17 = vrot.slane %v879_v4, 4 }
 0x1f8   : > { %971 = vrot.lane.b32.xlu0 %v963_v5, %s2833_s29  ;;  %v977_v24 = vrot.slane %v963_v5, 4 }
 0x1fa   : > { %v3119_v7 = vpop.f32.mrf.mxu2 }
 0x1fb   : > { %v799_v8 = vpop.f32.mrf.mxu0  ;;  %v880_v9 = vpop.f32.mrf.mxu1 }
 0x1fe   : > { %1096 = vrot.lane.b32.xlu1 %v879_v4, %s2833_s29  ;;  %968 = vrot.lane.b32.xlu2 %v963_v5, %s2832_s5 }
 0x202   : > { %v961_v10 = vpop.f32.mrf.mxu2 }
 0x206   : > { %965 = vrot.lane.b32.xlu1 %v963_v5, %s2831_s3 }
 0x250   : > { %v1091_v11 = vpop.permute.xlu2 %1090 }
 0x251   : > { %v1113_v26 = vrot.slane %v1091_v11, 4 }
 0x258   : > { %v969_v15 = vpop.permute.xlu2 %968 }
 0x259   : > { %v974_v20 = vrot.slane %v969_v15, 4  ;;  %v978_v28 = vsel %vm975_vm7, %v969_v15, %v977_v24 }
 0x25a   : > { %v986_v37 = vperm.slane %v978_v28, %v3125_v19 }
 0x25b   : > { %v976_v27 = vsel %vm975_vm7, %v974_v20, %v963_v5 }
 0x25c   : > { %v982_v36 = vperm.slane %v976_v27, %v3125_v19  ;;  %v1013_v52 = vrot.slane %v986_v37, 4 }
 0x25e   : > { %v1001_v51 = vrot.slane %v982_v36, 4 }
 0x268   : > { %v1094_v14 = vpop.permute.xlu1 %1093 }
 0x269   : > { %v1099_v16 = vrot.slane %v1094_v14, 4  ;;  %v1102_v18 = vsel %vm975_vm7, %v1094_v14, %v1101_v17 }
 0x26a   : > { %v1110_v25 = vperm.slane %v1102_v18, %v3125_v19  ;;  %v972_v43 = vpop.permute.xlu0 %971 }
 0x26b   : > { %v1100_v21 = vsel %vm975_vm7, %v1099_v16, %v879_v4  ;;  %v987_v53 = vrot.slane %v972_v43, 4 }
 0x26c   : > { %v1106_v29 = vperm.slane %v1100_v21, %v3125_v19  ;;  %v1137_v34 = vrot.slane %v1110_v25, 4 }
 0x26e   : > { %v1125_v39 = vrot.slane %v1106_v29, 4 }
 0x270   : > { %v1097_v30 = vpop.permute.xlu1 %1096 }
 0x271   : > { %v1111_v32 = vrot.slane %v1097_v30, 4  ;;  %v1114_v33 = vsel %vm975_vm7, %v1097_v30, %v1113_v26 }
 0x272   : > { %v1122_v35 = vperm.slane %v1114_v33, %v3125_v19 }
 0x273   : > { %v1112_v38 = vsel %vm975_vm7, %v1111_v32, %v1091_v11 }
 0x274   : > { %v1118_v40 = vperm.slane %v1112_v38, %v3125_v19  ;;  %v1135_v41 = vrot.slane %v1122_v35, 4  ;;  %v1138_v42 = vsel %vm975_vm7, %v1122_v35, %v1137_v34 }
 0x275   : > { %v1146_v44 = vperm.slane %v1138_v42, %v3132_v31 }
 0x276   : > { %v1123_v45 = vrot.slane %v1118_v40, 4  ;;  %v1126_v46 = vsel %vm975_vm7, %v1118_v40, %v1125_v39  ;;  %v1136_v47 = vsel %vm975_vm7, %v1135_v41, %v1110_v25 }
 0x277   : > { %v1134_v48 = vperm.slane %v1126_v46, %v3132_v31  ;;  %v1142_v49 = vperm.slane %v1136_v47, %v3132_v31  ;;  %v1153_v50 = vrot.slane %v1146_v44, 4 }
 0x278   : > { %v1124_v54 = vsel %vm975_vm7, %v1123_v45, %v1106_v29  ;;  %v966_v55 = vpop.permute.xlu1 %965 }
 0x279   : > { %v1130_v56 = vperm.slane %v1124_v54, %v3132_v31  ;;  %v1149_v57 = vrot.slane %v1134_v48, 4  ;;  %v1151_v58 = vrot.slane %v1142_v49, 4  ;;  %v1154_v59 = vsel %vm975_vm7, 0.0, %v1153_v50 }
 0x27a   : > { %v1166_v60 = vsel %vm975_vm7, %v1153_v50, %v1142_v49  ;;  %v1171_v61 = vrot.slane %v1154_v59, 4  ;;  %v988_v62 = vsel %vm975_vm7, %v987_v53, %v966_v55  ;;  %v989_v63 = vrot.slane %v966_v55, 4 }
 0x27b   : > { %v1147_v0 = vrot.slane %v1130_v56, 4  ;;  %v1150_v1 = vsel %vm975_vm7, 0.0, %v1149_v57  ;;  %v1152_v2 = vsel %vm975_vm7, 0.0, %v1151_v58  ;;  %v1170_v3 = vperm.slane %v1166_v60, %v3125_v19 }
 0x27c   : > { %v1160_v4 = vrot.slane %v1150_v1, 4  ;;  %v1172_v5 = vsel %vm975_vm7, %v1171_v61, %v1152_v2  ;;  %v990_v8 = vsel %vm975_vm7, %v972_v43, %v989_v63  ;;  %v994_v9 = vperm.slane %v988_v62, %v3125_v19 }
 0x27d   : > { %v1176_v10 = vperm.slane %v1172_v5, %v3125_v19  ;;  %v998_v11 = vperm.slane %v990_v8, %v3125_v19  ;;  %v1148_v12 = vsel %vm975_vm7, 0.0, %v1147_v0  ;;  %v1155_v13 = vsel %vm975_vm7, %v1149_v57, %v1130_v56 }
 0x27e   : > { %v999_v14 = vrot.slane %v994_v9, 4  ;;  %v1002_v15 = vsel %vm975_vm7, %v994_v9, %v1001_v51  ;;  %v1159_v16 = vperm.slane %v1155_v13, %v3125_v19  ;;  %v1161_v17 = vsel %vm975_vm7, %v1160_v4, %v1148_v12 }
 0x27f   : > { %v1010_v18 = vperm.slane %v1002_v15, %v3132_v31  ;;  %v1011_v20 = vrot.slane %v998_v11, 4  ;;  %v1014_v21 = vsel %vm975_vm7, %v998_v11, %v1013_v52  ;;  %v1165_v22 = vperm.slane %v1161_v17, %v3125_v19 }
 0x280   : > { %v1000_v23 = vsel %vm975_vm7, %v999_v14, %v982_v36  ;;  %v1022_v24 = vperm.slane %v1014_v21, %v3132_v31  ;;  %v1179_v25 = vrot.slane %v1159_v16, 4  ;;  %v1189_v26 = vrot.slane %v1176_v10, 4 }
 0x281   : > { %v1006_v27 = vperm.slane %v1000_v23, %v3132_v31  ;;  %v1012_v28 = vsel %vm975_vm7, %v1011_v20, %v986_v37  ;;  %v1025_v29 = vrot.slane %v1010_v18, 4  ;;  %v1177_v30 = vrot.slane %v1165_v22, 4 }
 0x282   : > { %v1018_v32 = vperm.slane %v1012_v28, %v3132_v31  ;;  %v1029_v33 = vrot.slane %v1022_v24, 4  ;;  %v1190_v36 = vsel %vm975_vm7, %v1189_v26, %v1170_v3  ;;  %v1180_v42 = vsel %vm975_vm7, %v1165_v22, %v1179_v25 }
 0x283   : > { %v1023_v34 = vrot.slane %v1006_v27, 4  ;;  %v1026_v35 = vsel %vm975_vm7, 0.0, %v1025_v29  ;;  %v1178_v38 = vsel %vm975_vm7, %v1177_v30, %v1159_v16  ;;  %v1031_v46 = vsel %vm975_vm7, %v1025_v29, %v1006_v27 }
 0x284   : > { %v1027_v39 = vrot.slane %v1018_v32, 4  ;;  %v1030_v40 = vsel %vm975_vm7, 0.0, %v1029_v33  ;;  %v1036_v41 = vrot.slane %v1026_v35, 4  ;;  %v1184_v44 = vperm.slane %v1178_v38, %v3132_v31 }
 0x285   : > { %v1024_v37 = vsel %vm975_vm7, 0.0, %v1023_v34  ;;  %v1047_v43 = vrot.slane %v1030_v40, 4  ;;  %v1042_v48 = vsel %vm975_vm7, %v1029_v33, %v1018_v32  ;;  %v1196_v51 = vperm.slane %v1190_v36, %v3132_v31 }
 0x286   : > { %v1028_v45 = vsel %vm975_vm7, 0.0, %v1027_v39  ;;  %v1037_v47 = vsel %vm975_vm7, %v1036_v41, %v1024_v37  ;;  %v1188_v52 = vperm.slane %v1180_v42, %v3132_v31  ;;  %v1191_v54 = vrot.slane %v1170_v3, 4 }
 0x287   : > { %v1041_v49 = vperm.slane %v1037_v47, %v3125_v19  ;;  %v1048_v50 = vsel %vm975_vm7, %v1047_v43, %v1028_v45  ;;  %v1203_v55 = vrot.slane %v1184_v44, 4  ;;  %v1035_v56 = vperm.slane %v1031_v46, %v3125_v19  ;;  %v2501_v45 = vld [vmem:[%s3402_s6] ss:$0 sm:$0xff] }
 0x288   : > { %v1052_v53 = vperm.slane %v1048_v50, %v3125_v19  ;;  %v1201_v57 = vrot.slane %v1196_v51, 4  ;;  %v1207_v58 = vrot.slane %v1188_v52, 4  ;;  %v1046_v60 = vperm.slane %v1042_v48, %v3125_v19 }
 0x289   : > { %v1053_v59 = vrot.slane %v1041_v49, 4  ;;  %v1192_v61 = vsel %vm975_vm7, %v1176_v10, %v1191_v54  ;;  %v1204_v62 = vsel %vm975_vm7, %v1196_v51, %v1203_v55  ;;  %v1055_v24 = vrot.slane %v1035_v56, 4 }
 0x28a   : > { %v1065_v63 = vrot.slane %v1052_v53, 4  ;;  %v1202_v0 = vsel %vm975_vm7, %v1201_v57, %v1184_v44  ;;  %v1200_v1 = vperm.slane %v1192_v61, %v3132_v31  ;;  %v1210_v2 = vpack.c.bf16 %v1204_v62, %v1204_v62 }
 0x28b   : > { %v1054_v3 = vsel %vm975_vm7, %v1053_v59, %v1035_v56  ;;  %v1209_v4 = vpack.c.bf16 %v1202_v0, %v1202_v0  ;;  %v1067_v23 = vrot.slane %v1046_v60, 4  ;;  %v1056_v29 = vsel %vm975_vm7, %v1041_v49, %v1055_v24 }
 0x28c   : > { %v1060_v5 = vperm.slane %v1054_v3, %v3132_v31  ;;  %v1066_v8 = vsel %vm975_vm7, %v1065_v63, %v1046_v60  ;;  %v1208_v9 = vsel %vm975_vm7, %v1200_v1, %v1207_v58  ;;  %v1361_v10 = vsel %vm1337_vm8, %v1210_v2, 0 }
 0x28d   : > { %v1205_v11 = vrot.slane %v1200_v1, 4  ;;  %v1072_v12 = vperm.slane %v1066_v8, %v3132_v31  ;;  %v1342_v13 = vsel %vm1337_vm8, %v1209_v4, 0  ;;  %v1212_v14 = vpack.c.bf16 %v1208_v9, %v1208_v9  ;;  %1370 = vmatpush.bf16.xpose.msra.mxu3 %v1361_v10 }
 0x28e   : > { %v1079_v15 = vrot.slane %v1060_v5, 4  ;;  %1351 = vmatpush.bf16.xpose.msrb.mxu0 %v1342_v13  ;;  %v1068_v28 = vsel %vm975_vm7, %v1052_v53, %v1067_v23  ;;  %v1064_v32 = vperm.slane %v1056_v29, %v3132_v31  ;;  %v960_v48 = vadd.f32 %v2501_v45, %v3119_v7 }
 0x28f   : > { %v1206_v16 = vsel %vm975_vm7, %v1205_v11, %v1188_v52  ;;  %v1077_v17 = vrot.slane %v1072_v12, 4  ;;  %v1399_v18 = vsel %vm1337_vm8, %v1212_v14, 0  ;;  %v1076_v30 = vperm.slane %v1068_v28, %v3132_v31 }
 0x290   : > { %v1211_v20 = vpack.c.bf16 %v1206_v16, %v1206_v16  ;;  %v1080_v21 = vsel %vm975_vm7, %v1072_v12, %v1079_v15  ;;  %v1083_v34 = vrot.slane %v1064_v32, 4  ;;  %v1225_v4 = vrot.slane %v960_v48, 4 }
 0x291   : > { %v1078_v22 = vsel %vm975_vm7, %v1077_v17, %v1060_v5  ;;  %v1086_v27 = vpack.c.bf16 %v1080_v21, %v1080_v21  ;;  %v1081_v33 = vrot.slane %v1076_v30, 4 }
 0x292   : > { %v1380_v25 = vsel %vm1337_vm8, %v1211_v20, 0  ;;  %v1085_v26 = vpack.c.bf16 %v1078_v22, %v1078_v22  ;;  %v1084_v38 = vsel %vm975_vm7, %v1076_v30, %v1083_v34 }
 0x293   : > { %v1082_v35 = vsel %vm975_vm7, %v1081_v33, %v1064_v32  ;;  %v1088_v39 = vpack.c.bf16 %v1084_v38, %v1084_v38 }
 0x294   : > { %2227 = vmatmul.msk.bf16.vlgmr.msra.gmra.mxu3 %vm1337_vm8, %v1086_v27  ;;  %v1087_v36 = vpack.c.bf16 %v1082_v35, %v1082_v35 }
 0x295   : > { %1389 = vmatpush.bf16.xpose.msrb.mxu3 %v1380_v25  ;;  %2226 = vmatmul.msk.bf16.vlgmr.msrb.gmra.mxu0 %vm1337_vm8, %v1085_v26 }
 0x296   : > { %1408 = vmatpush.bf16.xpose.msra.mxu0 %v1399_v18 }
 0x2a4   : > { %2228 = vmatmul.msk.bf16.vlgmr.msrb.gmra.mxu3 %vm1337_vm8, %v1087_v36 }
 0x2a5   : > { %2229 = vmatmul.msk.bf16.vlgmr.msra.gmra.mxu0 %vm1337_vm8, %v1088_v39 }
 0x312   : > { %v1353_v40 = vpop.f32.mrf.mxu0 }
 0x313   : > { %v1415_v41 = vsel %vm1414_vm9, %v1353_v40, -inf }
 0x314   : > { %1416 = vmax.xlane.f32.xlu0 %v1415_v41 }
 0x317   : > { %v1372_v42 = vpop.f32.mrf.mxu3 }
 0x318   : > { %v1418_v37 = vsel %vm1414_vm9, %v1372_v42, -inf }
 0x319   : > { %1419 = vmax.xlane.f32.xlu1 %v1418_v37 }
 0x31a   : > { %v1355_v43 = vpop.f32.mrf.mxu0 }
 0x31f   : > { %v1374_v44 = vpop.f32.mrf.mxu3 }
 0x322   : > { %v1410_v46 = vpop.f32.mrf.mxu0 }
 0x323   : > { %v1424_v47 = vsel %vm1414_vm9, %v1410_v46, -inf }
 0x324   : > { %1425 = vmax.xlane.f32.xlu2 %v1424_v47 }
 0x327   : > { %v1391_v49 = vpop.f32.mrf.mxu3 }
 0x328   : > { %1220 = vrot.lane.b32.xlu0 %v960_v48, %s2833_s29  ;;  %v1421_v51 = vsel %vm1414_vm9, %v1391_v49, -inf }
 0x32a   : > { %v1412_v50 = vpop.f32.mrf.mxu0 }
 0x32c   : > { %1422 = vmax.xlane.f32.xlu2 %v1421_v51 }
 0x32f   : > { %v1393_v52 = vpop.f32.mrf.mxu3 }
 0x332   : > { %1217 = vrot.lane.b32.xlu1 %v960_v48, %s2832_s5 }
 0x344   : > { %1214 = vrot.lane.b32.xlu2 %v960_v48, %s2831_s3 }
 0x387   : > { %v1417_v53 = vpop.xlane.xlu0 %1416 }
 0x388   : > { %v1427_v54 = vsub.f32 %v1353_v40, %v1417_v53 }
 0x38a   : > { %v1431_v55 = vmul.f32 1.442695, %v1427_v54 }
 0x38c   : > { %2511 = vpow2.f32 %v1431_v55  ;;  %v1420_v56 = vpop.xlane.xlu1 %1419 }
 0x38d   : > { %v1428_v57 = vsub.f32 %v1372_v42, %v1420_v56 }
 0x38f   : > { %v1433_v58 = vmul.f32 1.442695, %v1428_v57 }
 0x391   : > { %2513 = vpow2.f32 %v1433_v58 }
 0x392   : > { %v3227_v7 = vpop.eup %2511 }
 0x393   : > { %v1439_v59 = vsel %vm1414_vm9, %v3227_v7, 0.0 }
 0x394   : > { %1440 = vadd.xlane.f32.xlu0 %v1439_v59 }
 0x397   : > { %v3231_v60 = vpop.eup %2513  ;;  %v1426_v61 = vpop.xlane.xlu2 %1425 }
 0x398   : > { %v1442_v62 = vsel %vm1414_vm9, %v3231_v60, 0.0  ;;  %v1430_v1 = vsub.f32 %v1410_v46, %v1426_v61 }
 0x399   : > { %1443 = vadd.xlane.f32.xlu1 %v1442_v62 }
 0x39a   : > { %v1221_v3 = vpop.permute.xlu0 %1220  ;;  %v1437_v10 = vmul.f32 1.442695, %v1430_v1 }
 0x39b   : > { %v1235_v11 = vrot.slane %v1221_v3, 4 }
 0x39f   : > { %v1423_v63 = vpop.xlane.xlu2 %1422 }
 0x3a0   : > { %v1429_v0 = vsub.f32 %v1391_v49, %v1423_v63 }
 0x3a2   : > { %v1435_v2 = vmul.f32 1.442695, %v1429_v0 }
 0x3a4   : > { %2515 = vpow2.f32 %v1435_v2  ;;  %v1218_v5 = vpop.permute.xlu1 %1217 }
 0x3a5   : > { %v1223_v8 = vrot.slane %v1218_v5, 4  ;;  %v1226_v9 = vsel %vm975_vm7, %v1218_v5, %v1225_v4  ;;  %2517 = vpow2.f32 %v1437_v10 }
 0x3a6   : > { %v1234_v13 = vperm.slane %v1226_v9, %v3125_v19 }
 0x3a7   : > { %v1224_v12 = vsel %vm975_vm7, %v1223_v8, %v960_v48  ;;  %v1215_v14 = vpop.permute.xlu2 %1214 }
 0x3a8   : > { %v1230_v15 = vperm.slane %v1224_v12, %v3125_v19  ;;  %v1236_v16 = vsel %vm975_vm7, %v1235_v11, %v1215_v14  ;;  %v1237_v17 = vrot.slane %v1215_v14, 4  ;;  %v1261_v23 = vrot.slane %v1234_v13, 4 }
 0x3a9   : > { %v1242_v18 = vperm.slane %v1236_v16, %v3125_v19 }
 0x3aa   : > { %v3241_v20 = vpop.eup %2515  ;;  %v1249_v21 = vrot.slane %v1230_v15, 4  ;;  %v1238_v22 = vsel %vm975_vm7, %v1221_v3, %v1237_v17 }
 0x3ab   : > { %v1246_v24 = vperm.slane %v1238_v22, %v3125_v19  ;;  %v1247_v25 = vrot.slane %v1242_v18, 4  ;;  %v1445_v26 = vsel %vm1414_vm9, %v3241_v20, 0.0  ;;  %v3254_v36 = vpop.eup %2517 }
 0x3ac   : > { %v1250_v27 = vsel %vm975_vm7, %v1242_v18, %v1249_v21  ;;  %1446 = vadd.xlane.f32.xlu2 %v1445_v26  ;;  %v1448_v49 = vsel %vm1414_vm9, %v3254_v36, 0.0 }
 0x3ad   : > { %v1248_v28 = vsel %vm975_vm7, %v1247_v25, %v1230_v15  ;;  %v1258_v29 = vperm.slane %v1250_v27, %v3132_v31  ;;  %v1259_v30 = vrot.slane %v1246_v24, 4  ;;  %v1262_v32 = vsel %vm975_vm7, %v1246_v24, %v1261_v23 }
 0x3ae   : > { %v1254_v33 = vperm.slane %v1248_v28, %v3132_v31  ;;  %v1270_v34 = vperm.slane %v1262_v32, %v3132_v31 }
 0x3af   : > { %v1260_v35 = vsel %vm975_vm7, %v1259_v30, %v1234_v13  ;;  %v1273_v38 = vrot.slane %v1258_v29, 4 }
 0x3b0   : > { %v1266_v39 = vperm.slane %v1260_v35, %v3132_v31  ;;  %v1271_v40 = vrot.slane %v1254_v33, 4  ;;  %v1277_v41 = vrot.slane %v1270_v34, 4 }
 0x3b1   : > { %v1274_v42 = vsel %vm975_vm7, 0.0, %v1273_v38  ;;  %v1279_v37 = vsel %vm975_vm7, %v1273_v38, %v1254_v33 }
 0x3b2   : > { %v1275_v43 = vrot.slane %v1266_v39, 4  ;;  %v1278_v44 = vsel %vm975_vm7, 0.0, %v1277_v41  ;;  %v1283_v45 = vperm.slane %v1279_v37, %v3125_v19  ;;  %v1284_v46 = vrot.slane %v1274_v42, 4 }
 0x3b3   : > { %v1290_v47 = vsel %vm975_vm7, %v1277_v41, %v1266_v39  ;;  %v1295_v48 = vrot.slane %v1278_v44, 4  ;;  %v1272_v50 = vsel %vm975_vm7, 0.0, %v1271_v40 }
 0x3b4   : > { %v1276_v51 = vsel %vm975_vm7, 0.0, %v1275_v43  ;;  %v1294_v52 = vperm.slane %v1290_v47, %v3125_v19  ;;  %1449 = vadd.xlane.f32.xlu2 %v1448_v49  ;;  %v1303_v53 = vrot.slane %v1283_v45, 4  ;;  %v1285_v54 = vsel %vm975_vm7, %v1284_v46, %v1272_v50 }
 0x3b5   : > { %v1296_v55 = vsel %vm975_vm7, %v1295_v48, %v1276_v51  ;;  %v1289_v56 = vperm.slane %v1285_v54, %v3125_v19 }
 0x3b6   : > { %v1300_v57 = vperm.slane %v1296_v55, %v3125_v19  ;;  %v1315_v58 = vrot.slane %v1294_v52, 4 }
 0x3b7   : > { %v1304_v59 = vsel %vm975_vm7, %v1289_v56, %v1303_v53  ;;  %v1301_v62 = vrot.slane %v1289_v56, 4 }
 0x3b8   : > { %v1316_v61 = vsel %vm975_vm7, %v1300_v57, %v1315_v58  ;;  %v1313_v63 = vrot.slane %v1300_v57, 4  ;;  %v1312_v0 = vperm.slane %v1304_v59, %v3132_v31 }
 0x3b9   : > { %v1324_v1 = vperm.slane %v1316_v61, %v3132_v31  ;;  %v1302_v2 = vsel %vm975_vm7, %v1301_v62, %v1283_v45 }
 0x3ba   : > { %v1314_v3 = vsel %vm975_vm7, %v1313_v63, %v1294_v52  ;;  %v1331_v5 = vrot.slane %v1312_v0, 4  ;;  %v1308_v8 = vperm.slane %v1302_v2, %v3132_v31 }
 0x3bb   : > { %v1329_v4 = vrot.slane %v1324_v1, 4  ;;  %v1320_v9 = vperm.slane %v1314_v3, %v3132_v31 }
 0x3bc   : > { %v1332_v11 = vsel %vm975_vm7, %v1324_v1, %v1331_v5  ;;  %v1327_v13 = vrot.slane %v1308_v8, 4 }
 0x3bd   : > { %v1330_v10 = vsel %vm975_vm7, %v1329_v4, %v1312_v0  ;;  %v1325_v12 = vrot.slane %v1320_v9, 4  ;;  %v1336_v15 = vpack.c.bf16 %v1332_v11, %v1332_v11 }
 0x3be   : > { %v1335_v14 = vpack.c.bf16 %v1330_v10, %v1330_v10  ;;  %v1328_v17 = vsel %vm975_vm7, %v1320_v9, %v1327_v13 }
 0x3bf   : > { %v1326_v16 = vsel %vm975_vm7, %v1325_v12, %v1308_v8  ;;  %v1525_v21 = vsel %vm1466_vm10, %v1336_v15, 0  ;;  %v1334_v23 = vpack.c.bf16 %v1328_v17, %v1328_v17 }
 0x3c0   : > { %v1506_v18 = vsel %vm1466_vm10, %v1335_v14, 0  ;;  %v1333_v22 = vpack.c.bf16 %v1326_v16, %v1326_v16  ;;  %1534 = vmatpush.bf16.msrb.mxu0 %v1525_v21 }
 0x3c1   : > { %1515 = vmatpush.bf16.msra.mxu3 %v1506_v18  ;;  %v1487_v25 = vsel %vm1466_vm10, %v1334_v23, 0 }
 0x3c2   : > { %v1468_v24 = vsel %vm1466_vm10, %v1333_v22, 0  ;;  %1496 = vmatpush.bf16.msrb.mxu2 %v1487_v25 }
 0x3c3   : > { %1477 = vmatpush.bf16.msrb.mxu1 %v1468_v24 }
 0x407   : > { %v1441_v26 = vpop.xlane.xlu0 %1440 }
 0x408   : > { %2519 = vrcp.f32 %v1441_v26 }
 0x40c   : > { %v1444_v27 = vpop.xlane.xlu1 %1443 }
 0x40d   : > { %2521 = vrcp.f32 %v1444_v27 }
 0x40e   : > { %v2520_v28 = vpop.eup %2519 }
 0x40f   : > { %v1455_v29 = vmul.f32 %v2520_v28, %v3227_v7 }
 0x411   : > { %v1459_v30 = vpack.c.bf16 %v1455_v29, %v1455_v29 }
 0x413   : > { %v2522_v32 = vpop.eup %2521  ;;  %2230 = vmatmul.msk.bf16.vlgmr.msrb.gmra.mxu1 %vm1414_vm9, %v1459_v30 }
 0x414   : > { %v1456_v33 = vmul.f32 %v2522_v32, %v3231_v60 }
 0x416   : > { %v1460_v34 = vpack.c.bf16 %v1456_v33, %v1456_v33 }
 0x418   : > { %2231 = vmatmul.msk.bf16.vlgmr.msrb.gmra.mxu2 %vm1414_vm9, %v1460_v34 }
 0x41f   : > { %v1447_v35 = vpop.xlane.xlu2 %1446 }
 0x420   : > { %2523 = vrcp.f32 %v1447_v35 }
 0x426   : > { %v2524_v38 = vpop.eup %2523 }
 0x427   : > { %v1457_v39 = vmul.f32 %v2524_v38, %v3241_v20  ;;  %v1450_v40 = vpop.xlane.xlu2 %1449 }
 0x428   : > { %2525 = vrcp.f32 %v1450_v40 }
 0x429   : > { %v1461_v41 = vpack.c.bf16 %v1457_v39, %v1457_v39 }
 0x42b   : > { %2232 = vmatmul.msk.bf16.vlgmr.msra.gmra.mxu3 %vm1414_vm9, %v1461_v41 }
 0x42e   : > { %v2526_v7 = vpop.eup %2525 }
 0x42f   : > { %v1458_v42 = vmul.f32 %v2526_v7, %v3254_v36 }
 0x431   : > { %v1462_v37 = vpack.c.bf16 %v1458_v42, %v1458_v42 }
 0x433   : > { %2233 = vmatmul.msk.bf16.vlgmr.msrb.gmra.mxu0 %vm1414_vm9, %v1462_v37 }
 0x490   : > { %v1479_v60 = vpop.f32.mrf.mxu1 }
 0x491   : > { %v1542_v46 = vrot.slane %v1479_v60, 4 }
 0x498   : > { %v1481_v43 = vpop.f32.mrf.mxu1 }
 0x49b   : > { %v1498_v44 = vpop.f32.mrf.mxu2 }
 0x49c   : > { %v1554_v48 = vrot.slane %v1498_v44, 4 }
 0x4a3   : > { %v1500_v45 = vpop.f32.mrf.mxu2 }
 0x4ae   : > { %v1517_v47 = vpop.f32.mrf.mxu3 }
 0x4af   : > { %v1540_v49 = vrot.slane %v1517_v47, 4  ;;  %v1543_v20 = vsel %vm975_vm7, %v1517_v47, %v1542_v46 }
 0x4b0   : > { %v1551_v50 = vperm.slane %v1543_v20, %v3125_v19  ;;  %v1536_v51 = vpop.f32.mrf.mxu0  ;;  %v2365_v20 = vld [vmem:[#allocation10 + $0x38] sm:$0xff] }
 0x4b1   : > { %v1541_v52 = vsel %vm975_vm7, %v1540_v49, %v1479_v60  ;;  %v1552_v53 = vrot.slane %v1536_v51, 4  ;;  %v1555_v36 = vsel %vm975_vm7, %v1536_v51, %v1554_v48  ;;  %1732 = vmatpush.bf16.msra.mxu1 %v2365_v20  ;;  %v2363_v51 = vld [vmem:[#allocation10 + $0x28] sm:$0xff]  ;;  %v2504_v20 = vld [vmem:[%s3444_s12] ss:$0 sm:$0xff] }
 0x4b2   : > { %v1547_v54 = vperm.slane %v1541_v52, %v3125_v19  ;;  %v1578_v55 = vrot.slane %v1551_v50, 4  ;;  %v1563_v56 = vperm.slane %v1555_v36, %v3125_v19  ;;  %v2361_v52 = vld [vmem:[#allocation10 + $0x18] sm:$0xff]  ;;  %v2359_v36 = vld [vmem:[#allocation10 + $0x8] sm:$0xff] }
 0x4b3   : > { %v1553_v57 = vsel %vm975_vm7, %v1552_v53, %v1498_v44  ;;  %v2360_v53 = vld [vmem:[#allocation10 + $0x10] sm:$0xff] }
 0x4b4   : > { %v1566_v58 = vrot.slane %v1547_v54, 4  ;;  %v1559_v59 = vperm.slane %v1553_v57, %v3125_v19  ;;  %v1576_v61 = vrot.slane %v1563_v56, 4  ;;  %v1579_v62 = vsel %vm975_vm7, %v1563_v56, %v1578_v55 }
 0x4b5   : > { %v1587_v63 = vperm.slane %v1579_v62, %v3132_v31 }
 0x4b6   : > { %v1564_v0 = vrot.slane %v1559_v59, 4  ;;  %v1567_v1 = vsel %vm975_vm7, %v1559_v59, %v1566_v58  ;;  %v1577_v2 = vsel %vm975_vm7, %v1576_v61, %v1551_v50  ;;  %v1519_v3 = vpop.f32.mrf.mxu3  ;;  %v2364_v50 = vld [vmem:[#allocation10 + $0x30] sm:$0xff] }
 0x4b7   : > { %v1575_v4 = vperm.slane %v1567_v1, %v3132_v31  ;;  %v1583_v5 = vperm.slane %v1577_v2, %v3132_v31  ;;  %v1594_v8 = vrot.slane %v1587_v63, 4  ;;  %1733 = vmatpush.bf16.msra.mxu1 %v2364_v50  ;;  %v2502_v63 = vld [vmem:[%s3404_s8] ss:$0 sm:$0xff] }
 0x4b8   : > { %v1565_v9 = vsel %vm975_vm7, %v1564_v0, %v1547_v54  ;;  %v1538_v10 = vpop.f32.mrf.mxu0  ;;  %v2358_v54 = vld [vmem:[#allocation10] sm:$0xff]  ;;  %v2531_v1 = vld [vmem:[%s3078_s26] sm:$0xff] }
 0x4b9   : > { %v1571_v11 = vperm.slane %v1565_v9, %v3132_v31  ;;  %v1590_v12 = vrot.slane %v1575_v4, 4  ;;  %v1592_v13 = vrot.slane %v1583_v5, 4  ;;  %v1595_v14 = vsel %vm975_vm7, 0.0, %v1594_v8 }
 0x4ba   : > { %v1607_v15 = vsel %vm975_vm7, %v1594_v8, %v1583_v5  ;;  %v1612_v16 = vrot.slane %v1595_v14, 4  ;;  %v2371_v14 = vld [vmem:[#allocation11 + $0x28] sm:$0xff] }
 0x4bb   : > { %v1588_v17 = vrot.slane %v1571_v11, 4  ;;  %v1591_v18 = vsel %vm975_vm7, 0.0, %v1590_v12  ;;  %v1593_v21 = vsel %vm975_vm7, 0.0, %v1592_v13  ;;  %v1611_v22 = vperm.slane %v1607_v15, %v3125_v19  ;;  %1734 = vmatpush.bf16.msra.mxu1 %v2363_v51  ;;  %v2372_v13 = vld [vmem:[#allocation11 + $0x30] sm:$0xff] }
 0x4bc   : > { %v1601_v23 = vrot.slane %v1591_v18, 4  ;;  %v1596_v24 = vsel %vm975_vm7, %v1590_v12, %v1571_v11  ;;  %v1613_v25 = vsel %vm975_vm7, %v1612_v16, %v1593_v21  ;;  %v2373_v12 = vld [vmem:[#allocation11 + $0x38] sm:$0xff]  ;;  %v2370_v16 = vld [vmem:[#allocation11 + $0x20] sm:$0xff]  ;;  %v2368_v21 = vld [vmem:[#allocation11 + $0x10] sm:$0xff] }
 0x4bd   : > { %v1589_v26 = vsel %vm975_vm7, 0.0, %v1588_v17  ;;  %v1600_v27 = vperm.slane %v1596_v24, %v3125_v19  ;;  %v1617_v28 = vperm.slane %v1613_v25, %v3125_v19  ;;  %v1632_v29 = vrot.slane %v1611_v22, 4  ;;  %1867 = vmatpush.bf16.msra.mxu2 %v2373_v12  ;;  %v2369_v18 = vld [vmem:[#allocation11 + $0x18] sm:$0xff] }
 0x4be   : > { %v1602_v30 = vsel %vm975_vm7, %v1601_v23, %v1589_v26 }
 0x4bf   : > { %v1606_v32 = vperm.slane %v1602_v30, %v3125_v19  ;;  %v1620_v33 = vrot.slane %v1600_v27, 4  ;;  %v1633_v34 = vsel %vm975_vm7, %v1617_v28, %v1632_v29  ;;  %v1630_v35 = vrot.slane %v1617_v28, 4  ;;  %v2381_v28 = vld [vmem:[#allocation13 + $0x38] sm:$0xff]  ;;  %v2380_v30 = vld [vmem:[#allocation13 + $0x30] sm:$0xff] }
 0x4c0   : > { %v1641_v38 = vperm.slane %v1633_v34, %v3132_v31  ;;  %1946 = vmatpush.bf16.msrb.mxu3 %v2381_v28 }
 0x4c1   : > { %v1621_v39 = vsel %vm975_vm7, %v1606_v32, %v1620_v33  ;;  %v1618_v40 = vrot.slane %v1606_v32, 4  ;;  %v1631_v41 = vsel %vm975_vm7, %v1630_v35, %v1611_v22  ;;  %1868 = vmatpush.bf16.msra.mxu2 %v2372_v13 }
 0x4c2   : > { %v1629_v7 = vperm.slane %v1621_v39, %v3132_v31  ;;  %v1646_v42 = vrot.slane %v1641_v38, 4  ;;  %v1637_v37 = vperm.slane %v1631_v41, %v3132_v31  ;;  %v2377_v41 = vld [vmem:[#allocation13 + $0x18] sm:$0xff] }
 0x4c3   : > { %v1619_v60 = vsel %vm975_vm7, %v1618_v40, %v1600_v27  ;;  %v2366_v27 = vld [vmem:[#allocation11] sm:$0xff] }
 0x4c4   : > { %v1647_v19 = vsel %vm975_vm7, %v1646_v42, %v1629_v7  ;;  %v1648_v43 = vrot.slane %v1629_v7, 4  ;;  %v1625_v44 = vperm.slane %v1619_v60, %v3132_v31  ;;  %v1642_v45 = vrot.slane %v1637_v37, 4  ;;  %v2362_v31 = vld [vmem:[#allocation10 + $0x20] sm:$0xff]  ;;  %1947 = vmatpush.bf16.msrb.mxu3 %v2380_v30  ;;  %v2376_v60 = vld [vmem:[#allocation13 + $0x10] sm:$0xff] }
 0x4c5   : > { %1655 = vrot.lane.b32.xlu2 %v1647_v19, %s2832_s5  ;;  %1735 = vmatpush.bf16.msra.mxu1 %v2362_v31  ;;  %v2378_v40 = vld [vmem:[#allocation13 + $0x20] sm:$0xff]  ;;  %s2331_s5 = sshll.u32 %s2950_s18, 3  ;;  %s1967_s18 = scalar_lea.sflag [#allocation4], %s3072_s14 }
 0x4c6   : > { %v1649_v46 = vsel %vm975_vm7, %v1641_v38, %v1648_v43  ;;  %v1644_v47 = vrot.slane %v1625_v44, 4  ;;  %v1643_v48 = vsel %vm975_vm7, %v1642_v45, %v1625_v44  ;;  %1869 = vmatpush.bf16.msra.mxu2 %v2371_v14  ;;  %v2379_v38 = vld [vmem:[#allocation13 + $0x28] sm:$0xff]  ;;  %v2503_v43 = vld [vmem:[%s3407_s11] ss:$0 sm:$0xff]  ;;  %s1977_s7 = scalar_lea.hbm %s3446_s21, %s2331_s5 }
 0x4c7   : > { %1659 = vrot.lane.b32.xlu0 %v1649_v46, %s2831_s3  ;;  %s3445_s3 = sld [smem:[#allocation29_spill]]  ;;  %s1981_s12 = sshll.u32 %s1977_s7, 4  ;;  %s1982_s12 = int_to_ptr.hbm [resolvable:$true] %s1981_s12 }
 0x4c8   : > { %v1645_v49 = vsel %vm975_vm7, %v1637_v37, %v1644_v47  ;;  %1948 = vmatpush.bf16.msrb.mxu3 %v2379_v38  ;;  %s2756_s30 = sshra.s32 %s1982_s12, 4  ;;  %s2757_s30 = int_to_ptr.hbm [resolvable:$true] %s2756_s30 }
 0x4c9   : > { %1651 = vrot.lane.b32.xlu1 %v1645_v49, %s2833_s29  ;;  %1736 = vmatpush.bf16.msra.mxu1 %v2361_v52  ;;  %s2758_s16 = scalar_lea.hbm %s2757_s30, 8  ;;  %p2763_p12 = scmp.lt.s32.totalorder %s2757_s30, %s3446_s21 }
 0x4ca   : > { %1870 = vmatpush.bf16.msra.mxu2 %v2370_v16  ;;  %p2759_p1 = scmp.ne.s32.totalorder %s2757_s30, %s2758_s16  ;;  %p2764_p7 = scmp.lt.s32.totalorder %s2762_s0, %s2758_s16 }
 0x4cc   : > { %1949 = vmatpush.bf16.msrb.mxu3 %v2378_v40  ;;  %p2760_p3 = pnand %p2759_p1, %p3041_p4  ;;  %p2765_p8 = por %p2764_p7, %p2763_p12 }
 0x4cd   : > { %1737 = vmatpush.bf16.msra.mxu1 %v2360_v53  ;;  %v2375_v53 = vld [vmem:[#allocation13 + $0x8] sm:$0xff] }
 0x4ce   : > { %1871 = vmatpush.bf16.msra.mxu2 %v2369_v18  ;;  %p2761_p5 = pneg %p2760_p3 }
 0x4d0   : > { %1950 = vmatpush.bf16.msrb.mxu3 %v2377_v41  ;;  %p2766_p9 = pnand %p2765_p8, %p2761_p5 }
 0x4d1   : > { %1738 = vmatpush.bf16.msra.mxu1 %v2359_v36  ;;  %v2374_v36 = vld [vmem:[#allocation13] sm:$0xff] }
 0x4d2   : > { %1872 = vmatpush.bf16.msra.mxu2 %v2368_v21 }
 0x4d4   : > { %1951 = vmatpush.bf16.msrb.mxu3 %v2376_v60 }
 0x4d5   : > { %1739 = vmatpush.bf16.msra.mxu1 %v2358_v54  ;;  %v2505_v54 = vld [vmem:[%s3445_s3] ss:$0 sm:$0xff] }
 0x4d8   : > { %1952 = vmatpush.bf16.msrb.mxu3 %v2375_v53 }
 0x4dc   : > { %1953 = vmatpush.bf16.msrb.mxu3 %v2374_v36 }
 0x51f   : > { %v1656_v56 = vpop.permute.xlu2 %1655 }
 0x539   : > { %v1660_v58 = vpop.permute.xlu0 %1659 }
 0x53b   : > { %v1652_v55 = vpop.permute.xlu1 %1651 }
 0x53c   : > { %v1662_v57 = vsel %vm1337_vm8, %v1643_v48, %v1652_v55 }
 0x53d   : > { %v1664_v59 = vsel %vm1663_vm11, %v1662_v57, %v1656_v56 }
 0x53e   : > { %v1666_v61 = vsel %vm1665_vm12, %v1664_v59, %v1660_v58 }
 0x53f   : > { %v1667_v62 = vpack.c.bf16 %v1666_v61, %v1666_v61  ;;  %v2506_v61 = vld [vmem:[%s3447_s15] ss:$0 sm:$0xff] }
 0x541   : > { %1740 = vmatmul.bf16.vlgmr.msra.gmra.mxu1 %v1667_v62 }
 0x5be   : > { %v1741_v0 = vpop.f32.mrf.mxu1 }
 0x5bf   : > { %v1745_v2 = vadd.f32 %v2531_v1, %v1741_v0 }
 0x5c1   : > { %v3343_v3 = vadd.f32 %v2502_v63, %v1745_v2 }
 0x5c3   : > { %1753 = vadd.xlane.f32.xlu1 %v3343_v3 }
 0x5c6   : > { %v1743_v4 = vpop.f32.mrf.mxu1 }
 0x636   : > { %v1754_v5 = vpop.xlane.xlu1 %1753 }
 0x637   : > { %v1755_v8 = vmul.f32 0.015625, %v1754_v5 }
 0x639   : > { %v1756_v9 = vsub.f32 %v3343_v3, %v1755_v8 }
 0x63b   : > { %v1757_v10 = vmul.f32 %v3097_v6, %v1756_v9  ;;  %v2367_v6 = vld [vmem:[#allocation11 + $0x8] sm:$0xff]  ;;  %v1765_v48 = vmul.f32 %v2503_v43, %v1756_v9 }
 0x63c   : > { %1873 = vmatpush.bf16.msra.mxu2 %v2367_v6 }
 0x63d   : > { %v1758_v11 = vmul.f32 %v1757_v10, %v1757_v10 }
 0x63f   : > { %1759 = vadd.xlane.f32.xlu0 %v1758_v11 }
 0x640   : > { %1874 = vmatpush.bf16.msra.mxu2 %v2366_v27 }
 0x6b2   : > { %v1760_v15 = vpop.xlane.xlu0 %1759 }
 0x6b3   : > { %v1761_v17 = vmul.f32 0.015873017, %v1760_v15 }
 0x6b5   : > { %2527 = vrsqrt.f32 %v1761_v17  ;;  %vm1773_vm13 = vcmp.eq.f32.partialorder %v1761_v17, inf  ;;  %v1776_v33 = vand.u32 2147483648, %v1761_v17  ;;  %vm1775_vm14 = vcmp.eq.f32.partialorder %v1761_v17, 0.0 }
 0x6bb   : > { %v2528_v22 = vpop.eup %2527 }
 0x6bc   : > { %v1767_v23 = vmul.f32 %v2528_v22, %v1761_v17 }
 0x6be   : > { %v1768_v24 = vmul.f32 %v2528_v22, %v1767_v23 }
 0x6c0   : > { %v1769_v25 = vmul.f32 0.5, %v1768_v24 }
 0x6c2   : > { %v1770_v26 = vsub.f32 1.5, %v1769_v25 }
 0x6c4   : > { %v1771_v29 = vmul.f32 %v2528_v22, %v1770_v26 }
 0x6c6   : > { %v1772_v32 = vmul.f32 %v1771_v29, %v1761_v17 }
 0x6c8   : > { %v1774_v34 = vsel %vm1773_vm13, %v1761_v17, %v1772_v32 }
 0x6c9   : > { %v1777_v35 = vsel %vm1775_vm14, %v1776_v33, %v1774_v34 }
 0x6ca   : > { %v1778_v39 = vadd.f32 1e-06, %v1777_v35 }
 0x6cc   : > { %2529 = vrcp.f32 %v1778_v39  ;;  %v1790_v19 = vand.u32 2147483648, %v1778_v39  ;;  %v1788_v45 = vand.u32 2147483647, %v1778_v39  ;;  %vm1784_vm0 = vweird.f32 %v1778_v39 }
 0x6ce   : > { %v1791_v47 = vor.u32 1.1754944e-38, %v1790_v19  ;;  %vm1789_vm2 = vcmp.eq.f32.partialorder %v1788_v45, 8.507059e+37 }
 0x6d2   : > { %v2530_v7 = vpop.eup %2529 }
 0x6d3   : > { %v1780_v42 = vmul.f32 %v2530_v7, %v1778_v39  ;;  %vm1785_vm15 = vweird.f32 %v2530_v7 }
 0x6d4   : > { %vm1786_vm1 = vmor %vm1784_vm0, %vm1785_vm15 }
 0x6d5   : > { %v1781_v37 = vsub.f32 1.0, %v1780_v42 }
 0x6d7   : > { %v1782_v44 = vmul.f32 %v2530_v7, %v1781_v37 }
 0x6d9   : > { %v1783_v46 = vadd.f32 %v2530_v7, %v1782_v44 }
 0x6db   : > { %v1787_v49 = vsel %vm1786_vm1, %v2530_v7, %v1783_v46 }
 0x6dc   : > { %v1792_v50 = vsel %vm1789_vm2, %v1791_v47, %v1787_v49 }
 0x6dd   : > { %v1793_v51 = vmul.f32 %v1792_v50, %v1765_v48 }
 0x6df   : > { %v1797_v31 = vadd.f32 %v2504_v20, %v1793_v51 }
 0x6e1   : > { %v1798_v52 = vpack.c.bf16 %v1797_v31, %v1797_v31 }
 0x6e3   : > { %1875 = vmatmul.bf16.vlgmr.msra.gmra.mxu2 %v1798_v52 }
 0x766   : > { %v1876_v55 = vpop.f32.mrf.mxu2 }
 0x767   : > { %v1877_v56 = vadd.f32 %v2505_v54, %v1876_v55 }
 0x769   : > { %v1880_v57 = vmax.f32 %v1877_v56, 0.0 }
 0x76b   : > { %v1881_v58 = vpack.c.bf16 %v1880_v57, %v1880_v57 }
 0x76d   : > { %1954 = vmatmul.bf16.vlgmr.msrb.gmra.mxu3 %v1881_v58 }
 0x76e   : > { %v1878_v59 = vpop.f32.mrf.mxu2 }
 0x7f0   : > { %v1955_v62 = vpop.f32.mrf.mxu3 }
 0x7f1   : > { %v1959_v63 = vadd.f32 %v1955_v62, %v3343_v3 }
 0x7f3   : > { %v1964_v0 = vadd.f32 %v2506_v61, %v1959_v63 }
 0x7f5   : > { %1965 = vst [vmem:[%s664_s19] sm:$0xff] %v1964_v0 }
 0x7f6   : > { %2769 = shalt.err (!%p2766_p9)
}
 0x7f7   : > { %2408 = dma.vmem_to_hbm [thread:$0]  (%p3041_p4), %s1980_s23, 128, %s1982_s12, %s1967_s18  }
 0x7f8   : > { %v1957_v1 = vpop.f32.mrf.mxu3 }
 0x7f9 PF: > { %s1993_s14 = sand.u32 1, %s2808_s24   ;;  %p3448_p10 = scmp.ge.s32.totalorder %s2820_s27, 2 }
 0x7fa   : > { %s1994_s7 = scalar_lea.sflag [#allocation4], %s1993_s14 }
 0x7fb   : > { %p2434_p13 = pnand %p3448_p10, %p3045_p6 }
 0x7fd   : > { %p2435_p11 = pneg %p2434_p13 }
 0x7ff   : > { %2803 = dma.done.wait (%p2435_p11), %s1994_s7, 128  }
 0x800   : > { %2805 = vsyncadd (%p2435_p11), %s1994_s7, 4294967168  ;;  %s3449_s13 = sld [smem:[#allocation20_spill]]  ;;  %p33_p0 = scmp.ge.s32.totalorder %s3015_s20, 4  }
 0x801   : > { %s3450_s26 = sld [smem:[#allocation21_spill]]  ;;  %s3451_s24 = smov %s2812_s25 }
 0x802   : > { %s3453_s27 = smov %s3015_s20  ;;  %35 = sbr.rel (!%p33_p0) target bundleno = 20 (0x14), region = 157 }
 0x806   : > { %s3452_s25 = smov %s3449_s13 }
 0x807   :  { %2000 = vsyncpa [#allocation3], 1 }
 0x808   :  { %2002 = vsyncpa [#allocation3 + $0x1], 1 }
 0x809   :  { %2003 = vsyncpa [#allocation6], 1 }
 0x80a   :  { %2004 = vsyncpa [#allocation9], 1 }
 0x80b   :  { %2005 = vsyncpa [#allocation12], 1 }
 0x80c   :  { %2006 = vsyncpa [#allocation4], 1 }
 0x80d   :  { %2008 = vsyncpa [#allocation4 + $0x1], 1 }

</bundles_post_ra>
